<compile_context>
chip_gen: v6e
topology: v6e:2x2x1
jax: 0.10.0
libtpu: 0.0.40
codegen_flags: <defaults>
</compile_context>

<pallas_src>
import numpy as np
import jax
import jax.numpy as jnp
from jax.experimental import pallas as pl
from jax.experimental.pallas import tpu as pltpu

BN_EPS = 1e-5
ESM2_VOCAB = 33
_VMEM_LIMIT = 32 * 1024 * 1024


def _use_bf16_exp():
    # bf16 EUP only on v6e / v7x; keep f32 exp on v5e and older (correct either
    # way, this is purely a perf switch).
    try:
        kind = jax.devices()[0].device_kind.lower()
    except Exception:
        return False
    return ("v6" in kind) or ("v7" in kind)


# ============================= Pallas kernels =============================

def _make_lin_kernel(act, stats, n_rows, tm):
    """Tiled Linear (+ optional SiLU) (+ optional masked sum/sumsq stats)."""
    def kernel(x_ref, w_ref, b_ref, o_ref, *stat_refs):
        # bf16 MXU inputs, f32 accumulation.
        h = jnp.dot(x_ref[...], w_ref[...],
                    preferred_element_type=jnp.float32) + b_ref[...]
        if act:
            h = h * jax.nn.sigmoid(h)            # SiLU
        o_ref[...] = h.astype(o_ref.dtype)
        if stats:
            ssum_ref, ssq_ref = stat_refs
            # Exclude padded rows of the ragged final tile from the BN stats.
            row = (pl.program_id(0) * tm
                   + jax.lax.broadcasted_iota(jnp.int32, (tm, 1), 0))
            hm = jnp.where(row < n_rows, h, 0.0)
            ssum_ref[0] = jnp.sum(hm, axis=0, keepdims=True)
            ssq_ref[0] = jnp.sum(hm * hm, axis=0, keepdims=True)
    return kernel


def _gate_mul_kernel(h_ref, w_ref, b_ref, o_ref):
    # One block-diagonal (2H,2H) matmul for the two second-layer heads, then
    # sigmoid(gate) * emb via static lane slices (no zero-padded duplicate
    # matmuls, no HBM round-trip of gate/emb).
    y = jnp.dot(h_ref[...], w_ref[...],
                preferred_element_type=jnp.float32) + b_ref[...]
    half = y.shape[-1] // 2
    o_ref[...] = jax.nn.sigmoid(y[:, :half]) * y[:, half:]


def _make_quant_pred_kernel(inv_tau, num_codes, hidden, vocab, bf16_exp):
    def kernel(x_ref, cbT_ref, cb_ref, w1_ref, b1_ref, w2_ref, b2_ref, o_ref):
        x = x_ref[...]                                           # (tm, H) f32
        # logits = (x @ C^T) * (1/tau): bf16 MXU inputs, f32 accumulation,
        # codebook pre-transposed (D, M) so the RHS is already MXU-oriented.
        logits = jnp.dot(x.astype(jnp.bfloat16), cbT_ref[...],
                         preferred_element_type=jnp.float32) * inv_tau
        m = jnp.max(logits, axis=-1, keepdims=True)
        # argmax (first index achieving the max, like torch.argmax).
        # TODO(synk): jnp.argmax lowering in Mosaic is not relied on; the
        # iota/where/min emulation is kept for lowering safety.
        col = jax.lax.broadcasted_iota(jnp.int32, logits.shape, 1)
        idx = jnp.min(jnp.where(logits >= m, col, jnp.int32(num_codes)),
                      axis=-1, keepdims=True)
        if bf16_exp:
            # v6e/v7x: bf16 EUP exp (half the transcendental work).
            e = jnp.exp((logits - m).astype(jnp.bfloat16))
            s = jnp.sum(e.astype(jnp.float32), axis=-1, keepdims=True)
        else:
            e_f = jnp.exp(logits - m)                            # f32 EUP
            s = jnp.sum(e_f, axis=-1, keepdims=True)
            e = e_f.astype(jnp.bfloat16)
        # Normalize AFTER the matmul: softmax is linear in 1/s, so this drops a
        # full (tm, num_codes) divide; EUP reciprocal on the (tm,1) sum.
        zq = jnp.dot(e, cb_ref[...], preferred_element_type=jnp.float32) \
            * pl.reciprocal(s, approx=True)
        pred = zq + x                                            # fused residual
        # fused predictor2: Linear -> SiLU -> Linear -> log_softmax
        h = jnp.dot(pred.astype(jnp.bfloat16), w1_ref[...],
                    preferred_element_type=jnp.float32) + b1_ref[...]
        h = h * jax.nn.sigmoid(h)
        lg = jnp.dot(h.astype(jnp.bfloat16), w2_ref[...],
                     preferred_element_type=jnp.float32) + b2_ref[...]
        mm = jnp.max(lg, axis=-1, keepdims=True)
        lse = mm + jnp.log(jnp.sum(jnp.exp(lg - mm), axis=-1, keepdims=True))
        logp = lg - lse
        # Lane-packed output block (zq | pred | log_probs | idx | pad): the HBM
        # writeback is one dense 128-lane DMA per tile instead of 4 narrow ones.
        o_ref[:, 0:hidden] = zq
        o_ref[:, hidden:2 * hidden] = pred
        o_ref[:, 2 * hidden:2 * hidden + vocab] = logp
        o_ref[:, 2 * hidden + vocab:2 * hidden + vocab + 1] = idx.astype(jnp.float32)
    return kernel


# --------------------------- kernel wrappers -------------------------------

def _pallas_linear(x, w, b, *, act, stats, tm=1024, out_dtype=jnp.float32):
    """Row-tiled Linear(+SiLU)(+BN stats). x is cast to bf16 here (halves the
    dominant HBM read); weights are cast to bf16 for the MXU."""
    x = x.astype(jnp.bfloat16)
    n, din = x.shape
    dout = w.shape[1]
    nt = -(-n // tm)
    kernel = _make_lin_kernel(act=act, stats=stats, n_rows=n, tm=tm)
    in_specs = [pl.BlockSpec((tm, din), lambda i: (i, 0)),
                pl.BlockSpec((din, dout), lambda i: (0, 0)),
                pl.BlockSpec((1, dout), lambda i: (0, 0))]
    cp = pltpu.CompilerParams(dimension_semantics=("parallel",),
                              vmem_limit_bytes=_VMEM_LIMIT)
    if stats:
        out_shape = (jax.ShapeDtypeStruct((n, dout), out_dtype),
                     jax.ShapeDtypeStruct((nt, 1, dout), jnp.float32),
                     jax.ShapeDtypeStruct((nt, 1, dout), jnp.float32))
        out_specs = (pl.BlockSpec((tm, dout), lambda i: (i, 0)),
                     pl.BlockSpec((1, 1, dout), lambda i: (i, 0, 0)),
                     pl.BlockSpec((1, 1, dout), lambda i: (i, 0, 0)))
    else:
        out_shape = jax.ShapeDtypeStruct((n, dout), out_dtype)
        out_specs = pl.BlockSpec((tm, dout), lambda i: (i, 0))
    return pl.pallas_call(
        kernel, out_shape=out_shape, grid=(nt,),
        in_specs=in_specs, out_specs=out_specs, compiler_params=cp,
    )(x, w.astype(jnp.bfloat16), b.reshape(1, -1).astype(jnp.float32))


def _bn_fold(ssum, ssq, n_rows, gamma, beta, w_next, b_next):
    # BatchNorm1d (training-mode batch stats, biased variance) folded into the
    # NEXT Linear: (h - mean)*rstd*gamma + beta followed by @W + b is just
    # h @ (scale[:,None]*W) + (shift @ W + b).  Tiny XLA computation.
    mean = ssum.sum(axis=(0, 1)) / n_rows
    var = jnp.maximum(ssq.sum(axis=(0, 1)) / n_rows - mean * mean, 0.0)
    scale = gamma * jax.lax.rsqrt(var + BN_EPS)
    shift = beta - mean * scale
    return scale[:, None] * w_next, shift @ w_next + b_next


def pallas_embed_chain(x, params, tm=1024):
    # Fused chain Linear -> BN -> Linear -> SiLU -> BN -> Linear as three
    # row-tiled kernels with BN folded into the following Linear.
    (w0, b0, g0, be0, w1, b1, g1, be1, w2, b2) = params
    n = x.shape[0]
    h0, s0, q0 = _pallas_linear(x, w0, b0, act=False, stats=True, tm=tm,
                                out_dtype=jnp.bfloat16)
    w1f, b1f = _bn_fold(s0, q0, n, g0, be0, w1, b1)
    h1, s1, q1 = _pallas_linear(h0, w1f, b1f, act=True, stats=True, tm=tm,
                                out_dtype=jnp.bfloat16)
    w2f, b2f = _bn_fold(s1, q1, n, g1, be1, w2, b2)
    return _pallas_linear(h1, w2f, b2f, act=False, stats=False, tm=tm)


def pallas_gate_emb(x, params, tm=1024):
    # W_node_gate / W_node_emb share their input: one concatenated first layer
    # (Linear + SiLU + stats), BN folded into a block-diagonal second layer,
    # then sigmoid(gate) * emb in the second kernel.
    (w1, b1, g, be, w2, b2) = params
    n = x.shape[0]
    h, s, q = _pallas_linear(x, w1, b1, act=True, stats=True, tm=tm,
                             out_dtype=jnp.bfloat16)
    w2f, b2f = _bn_fold(s, q, n, g, be, w2, b2)
    din = h.shape[1]
    dout = w2.shape[1] // 2
    nt = -(-n // tm)
    return pl.pallas_call(
        _gate_mul_kernel,
        out_shape=jax.ShapeDtypeStruct((n, dout), jnp.float32),
        grid=(nt,),
        in_specs=[pl.BlockSpec((tm, din), lambda i: (i, 0)),
                  pl.BlockSpec((din, 2 * dout), lambda i: (0, 0)),
                  pl.BlockSpec((1, 2 * dout), lambda i: (0, 0))],
        out_specs=pl.BlockSpec((tm, dout), lambda i: (i, 0)),
        compiler_params=pltpu.CompilerParams(
            dimension_semantics=("parallel",),
            vmem_limit_bytes=_VMEM_LIMIT),
    )(h, w2f.astype(jnp.bfloat16), b2f.reshape(1, -1).astype(jnp.float32))


def pallas_quantize_predict(x, cbT, cb, pred_params, tau, tm=256):
    """Fused MeToken soft-quantization + residual + predictor2 + log_softmax.

    Grid over row tiles ("parallel" -> sharded over 2 TCs on v7x); the bf16
    codebook (both orientations) and predictor weights stay VMEM-resident.
    tm=256 by default (sweep 256/512 on v7x).  Outputs are packed into one
    128-lane slab and unpacked here.
    """
    n, d = x.shape
    num_codes = cb.shape[0]
    w1, b1, w2, b2 = pred_params
    vocab = w2.shape[1]
    used = 2 * d + vocab + 1
    pack_w = ((used + 127) // 128) * 128
    nt = -(-n // tm)
    kernel = _make_quant_pred_kernel(float(1.0 / tau), num_codes, d, vocab,
                                     _use_bf16_exp())
    packed = pl.pallas_call(
        kernel,
        out_shape=jax.ShapeDtypeStruct((n, pack_w), jnp.float32),
        grid=(nt,),
        in_specs=[pl.BlockSpec((tm, d), lambda i: (i, 0)),
                  pl.BlockSpec((d, num_codes), lambda i: (0, 0)),
                  pl.BlockSpec((num_codes, d), lambda i: (0, 0)),
                  pl.BlockSpec(w1.shape, lambda i: (0, 0)),
                  pl.BlockSpec(b1.shape, lambda i: (0, 0)),
                  pl.BlockSpec(w2.shape, lambda i: (0, 0)),
                  pl.BlockSpec(b2.shape, lambda i: (0, 0))],
        out_specs=pl.BlockSpec((tm, pack_w), lambda i: (i, 0)),
        compiler_params=pltpu.CompilerParams(
            dimension_semantics=("parallel",),
            vmem_limit_bytes=_VMEM_LIMIT),
    )(x, cbT, cb, w1, b1, w2, b2)
    zq = packed[:, :d]
    pred = packed[:, d:2 * d]
    logp = packed[:, 2 * d:2 * d + vocab]
    idx = packed[:, 2 * d + vocab].astype(jnp.int32)
    return zq, idx, pred, logp


# ========================= geometry helpers (JAX glue) ======================

def _normalize(x, axis=-1):
    n = jnp.linalg.norm(x, axis=axis, keepdims=True)
    safe = jnp.where(n > 0, n, 1.0)
    return jnp.where(n > 0, x / safe, 0.0)


def gather_nodes(nodes, idx):
    # nodes: (B, N, C), idx: (B, N, K) -> (B, N, K, C)
    B, N, C = nodes.shape
    K = idx.shape[-1]
    flat = idx.reshape(B, N * K).astype(jnp.int32)
    g = jnp.take_along_axis(nodes, flat[..., None], axis=1)
    return g.reshape(B, N, K, C)


def _quaternions(R):
    diag = jnp.diagonal(R, axis1=-2, axis2=-1)
    Rxx, Ryy, Rzz = diag[..., 0], diag[..., 1], diag[..., 2]
    magnitudes = 0.5 * jnp.sqrt(jnp.abs(
        1 + jnp.stack([Rxx - Ryy - Rzz, -Rxx + Ryy - Rzz, -Rxx - Ryy + Rzz], -1)))
    signs = jnp.sign(jnp.stack([R[..., 2, 1] - R[..., 1, 2],
                                R[..., 0, 2] - R[..., 2, 0],
                                R[..., 1, 0] - R[..., 0, 1]], -1))
    xyz = signs * magnitudes
    w = jnp.sqrt(jax.nn.relu(1 + Rxx + Ryy + Rzz))[..., None] / 2.0
    Q = jnp.concatenate([xyz, w], -1)
    return _normalize(Q, -1)


def _rbf(D, num_rbf=16):
    D_min, D_max = 2.0, 22.0
    mu = jnp.linspace(D_min, D_max, num_rbf)
    sigma = (D_max - D_min) / num_rbf
    return jnp.exp(-(((D[..., None] - mu) / sigma) ** 2))


def _get_rbf(A, B, E_idx=None, num_rbf=16, eps=1e-6):
    if E_idx is None:
        D = jnp.sqrt(jnp.sum((A - B) ** 2, -1) + eps)              # (B, N)
        return _rbf(D, num_rbf)                                     # (B, N, 16)
    D = jnp.sqrt(jnp.sum((A[:, :, None, :] - B[:, None, :, :]) ** 2, -1) + eps)
    D_nb = jnp.take_along_axis(D, E_idx.astype(jnp.int32), axis=2)   # (B, N, K)
    return _rbf(D_nb, num_rbf)                                      # (B, N, K, 16)


def _dihedrals(X, eps=1e-7):
    # standard PiFold-style 12-dim backbone angle features (helper not in reference)
    B, N = X.shape[:2]
    Xb = X[:, :, :3, :].reshape(B, 3 * N, 3)
    dX = Xb[:, 1:, :] - Xb[:, :-1, :]
    U = _normalize(dX, -1)
    u_0, u_1, u_2 = U[:, :-2, :], U[:, 1:-1, :], U[:, 2:, :]
    n_0 = _normalize(jnp.cross(u_0, u_1), -1)
    n_1 = _normalize(jnp.cross(u_1, u_2), -1)
    cosD = jnp.clip(jnp.sum(n_0 * n_1, -1), -1 + eps, 1 - eps)
    v = _normalize(jnp.cross(n_0, n_1), -1)
    D = jnp.sign(jnp.sum(-v * u_1, -1)) * jnp.arccos(cosD)
    D = jnp.pad(D, ((0, 0), (3, 0))).reshape(B, N, 3)
    dihed = jnp.concatenate([jnp.cos(D), jnp.sin(D)], -1)
    cosA = jnp.clip(jnp.sum(-u_0 * u_1, -1), -1 + eps, 1 - eps)
    A = jnp.pad(jnp.arccos(cosA), ((0, 0), (3, 0))).reshape(B, N, 3)
    bond = jnp.concatenate([jnp.cos(A), jnp.sin(A)], -1)
    return jnp.concatenate([dihed, bond], -1)                      # (B, N, 12)


def _get_v_direct(X, eps=1e-6):
    B, N = X.shape[:2]
    V = X
    Xb = X[:, :, :3, :].reshape(B, 3 * N, 3)
    dX = Xb[:, 1:, :] - Xb[:, :-1, :]
    U = _normalize(dX, -1)
    u_0, u_1 = U[:, :-2, :], U[:, 1:-1, :]
    n_0 = _normalize(jnp.cross(u_0, u_1), -1)
    b_1 = _normalize(u_0 - u_1, -1)
    n_0, b_1 = n_0[:, ::3, :], b_1[:, ::3, :]
    Xc = Xb[:, ::3, :]
    Qm = jnp.stack((b_1, n_0, jnp.cross(b_1, n_0)), 2).reshape(B, N - 1, 9)
    Qm = jnp.pad(Qm, ((0, 0), (0, 1), (0, 0))).reshape(B, N, 3, 3)[:, :, None, :, :]
    dX_inner = V[:, :, jnp.array([0, 2, 3]), :] - Xc[:, :, None, :]
    dU_inner = jnp.matmul(Qm, dX_inner[..., None])[..., 0]
    dU_inner = _normalize(dU_inner, -1)
    return dU_inner.reshape(B, N, -1)                               # (B, N, 9)


def _get_e_direct_angle(X, E_idx, E_idx_select, eps=1e-6):
    B, N = X.shape[:2]
    K = E_idx.shape[-1]
    V = X
    Xb = X[:, :, :3, :].reshape(B, 3 * N, 3)
    dX = Xb[:, 1:, :] - Xb[:, :-1, :]
    U = _normalize(dX, -1)
    u_0, u_1 = U[:, :-2, :], U[:, 1:-1, :]
    n_0 = _normalize(jnp.cross(u_0, u_1), -1)
    b_1 = _normalize(u_0 - u_1, -1)
    n_0, b_1 = n_0[:, ::3, :], b_1[:, ::3, :]
    Xc = Xb[:, ::3, :]
    Qm = jnp.stack((b_1, n_0, jnp.cross(b_1, n_0)), 2).reshape(B, N - 1, 9)
    Qm = jnp.pad(Qm, ((0, 0), (0, 1), (0, 0)))                      # (B, N, 9)
    Q_neighbors = gather_nodes(Qm, E_idx)                           # (B, N, K, 9)
    X_neighbors = gather_nodes(V[:, :, 1, :], E_idx)
    N_neighbors = gather_nodes(V[:, :, 0, :], E_idx)
    C_neighbors = gather_nodes(V[:, :, 2, :], E_idx)
    O_neighbors = gather_nodes(V[:, :, 3, :], E_idx)
    Qm = Qm.reshape(B, N, 3, 3)[:, :, None, :, :]
    Q_neighbors = Q_neighbors.reshape(B, N, K, 3, 3)
    dX = jnp.stack([X_neighbors, N_neighbors, C_neighbors, O_neighbors], axis=3) \
        - Xc[:, :, None, None, :]
    dU = jnp.matmul(Qm[:, :, :, None, :, :], dX[..., None])[..., 0]
    E_direct = _normalize(dU, -1).reshape(B, N, K, -1)              # (B, N, K, 12)
    R = jnp.matmul(jnp.swapaxes(Qm, -1, -2), Q_neighbors)
    q = _quaternions(R)                                             # (B, N, K, 4)
    return E_idx_select(E_direct), E_idx_select(q)


# ============================== parameters ==================================

class Args:
    hidden_dim = 32
    node_features = 32
    edge_features = 32
    vocab = 26
    num_encoder_layers = 3
    dropout = 0.1
    codebook_masknum = 16


def init_linear(key, din, dout):
    k1, k2 = jax.random.split(key)
    bound = 1.0 / np.sqrt(din)
    w = jax.random.uniform(k1, (din, dout), jnp.float32, -bound, bound)
    b = jax.random.uniform(k2, (dout,), jnp.float32, -bound, bound)
    return w, b


def _row(v):
    return v.reshape(1, -1)


def init_embed_chain(key, din, feat, hid):
    # Linear(din, feat) + BN(feat) + [Linear(feat, hid), SiLU, BN(hid), Linear(hid, hid)]
    # Weights kept in f32 masters (BN folding rescales them at run time).
    k0, k1, k2 = jax.random.split(key, 3)
    w0, b0 = init_linear(k0, din, feat)
    w1, b1 = init_linear(k1, feat, hid)
    w2, b2 = init_linear(k2, hid, hid)
    return (w0, b0, jnp.ones((feat,), jnp.float32), jnp.zeros((feat,), jnp.float32),
            w1, b1, jnp.ones((hid,), jnp.float32), jnp.zeros((hid,), jnp.float32),
            w2, b2)


def init_gate_emb(key, hid):
    # W_node_gate and W_node_emb (each Linear(2H,H), SiLU, BN(H), Linear(H,H)),
    # packed for the fused kernels: concatenated first layer (per-feature BN of
    # the concat == the two separate BNs), block-diagonal second layer.
    kg, ke = jax.random.split(key)
    kg1, kg2 = jax.random.split(kg)
    ke1, ke2 = jax.random.split(ke)
    w1g, b1g = init_linear(kg1, 2 * hid, hid)
    w2g, b2g = init_linear(kg2, hid, hid)
    w1e, b1e = init_linear(ke1, 2 * hid, hid)
    w2e, b2e = init_linear(ke2, hid, hid)
    w1cat = jnp.concatenate([w1g, w1e], axis=1)                     # (2H, 2H)
    b1cat = jnp.concatenate([b1g, b1e])                             # (2H,)
    g = jnp.ones((2 * hid,), jnp.float32)
    be = jnp.zeros((2 * hid,), jnp.float32)
    w2blk = jnp.zeros((2 * hid, 2 * hid), jnp.float32)
    w2blk = w2blk.at[:hid, :hid].set(w2g).at[hid:, hid:].set(w2e)   # block-diag
    b2cat = jnp.concatenate([b2g, b2e])
    return (w1cat, b1cat, g, be, w2blk, b2cat)


def init_predictor2(key, hid, vocab):
    k1, k2 = jax.random.split(key)
    w1, b1 = init_linear(k1, hid, 2 * hid)
    w2, b2 = init_linear(k2, 2 * hid, vocab)
    return (w1.astype(jnp.bfloat16), _row(b1), w2.astype(jnp.bfloat16), _row(b2))


# ================================ model =====================================

class MeTokenModelPallas:
    def __init__(self, args, key):
        self.args = args
        H, NF, EF = args.hidden_dim, args.node_features, args.edge_features
        ks = jax.random.split(key, 10)
        self.wo_esm = jax.random.normal(ks[0], (ESM2_VOCAB, H), jnp.float32)
        self.node_chain = init_embed_chain(ks[1], 117, NF, H)
        self.gate_emb = init_gate_emb(ks[2], H)
        self.seq_k_chain = init_embed_chain(ks[3], 272, EF, H)
        self.str_k_chain = init_embed_chain(ks[4], 272, EF, H)
        self.str_r_chain = init_embed_chain(ks[5], 272, EF, H)
        # MeToken codebook: N(0,1) rows, L2-normalized (matches _initialize_embeddings)
        cb = jax.random.normal(ks[6], (26 * 128, H), jnp.float32)
        self.codebook = cb / jnp.linalg.norm(cb, axis=1, keepdims=True)
        self.codebook_bf16 = self.codebook.astype(jnp.bfloat16)                   # (M, H)
        self.codebook_bf16_T = jnp.transpose(self.codebook).astype(jnp.bfloat16)  # (H, M)
        self.predictor2 = init_predictor2(ks[7], H, args.vocab)
        # codebook_mask (kept for fidelity; unused by the forward path below)
        perm = jax.random.permutation(ks[8], 26 * 128)[: args.codebook_masknum]
        self.codebook_mask = jnp.ones((26 * 128,), jnp.int32).at[perm].set(0)

    # ---- graph construction -------------------------------------------------
    @staticmethod
    def get_seq_knearest(B, L, k=11):
        i = jnp.arange(L)[:, None]
        j = jnp.arange(2 * k + 1)[None, :]
        idx = (i + j - k) % L
        return jnp.tile(idx[None], (B, 1, 1)).astype(jnp.int32)

    @staticmethod
    def get_str_knearest(x, mask, k=30, eps=1e-6):
        mask_2D = mask[:, None, :] * mask[:, :, None]
        dX = x[:, None, :, :] - x[:, :, None, :]
        D = (1.0 - mask_2D) * 1e6 + mask_2D * jnp.sqrt(jnp.sum(dX ** 2, -1) + eps)
        D_max = jnp.max(D, -1, keepdims=True)
        D_adjust = D + (1.0 - mask_2D) * (D_max + 1)
        kk = min(k, D_adjust.shape[-1])
        return jnp.argsort(D_adjust, axis=-1)[..., :kk].astype(jnp.int32)

    @staticmethod
    def get_r_ball_neighbors(x, mask, radius=10.0, max_k=100, eps=1e-6):
        B, N = mask.shape
        mask_2D = mask[:, None, :] * mask[:, :, None]
        dX = x[:, None, :, :] - x[:, :, None, :]
        D = (1.0 - mask_2D) * 1e6 + mask_2D * jnp.sqrt(jnp.sum(dX ** 2, -1) + eps)
        D_max = jnp.max(D, -1, keepdims=True)
        D_adjust = D + (1.0 - mask_2D) * (D_max + 1)
        within_r = D_adjust < radius
        within_r = within_r.at[:, :, 0].set(True)
        within_r = jnp.logical_and(mask_2D > 0, within_r)
        # Static neighbor-column bound (no device->host sync, no recompiles):
        # columns beyond the reference's data-dependent L are all-False in
        # within_r, so the masked-selected edge set is identical.
        L = min(max_k, N)
        r_eidx = jnp.tile(jnp.arange(L, dtype=jnp.int32)[None, None, :], (B, N, 1))
        return within_r[:, :, :L], r_eidx

    @staticmethod
    def idx_transform(mask, eidx, eidx_mask):
        B, N = mask.shape
        counts = mask.sum(axis=1)
        shift = jnp.cumsum(counts) - counts
        src = shift.reshape(B, 1, 1) + eidx
        src = src[eidx_mask].reshape(1, -1)
        dst = shift.reshape(B, 1, 1) + jnp.broadcast_to(
            jnp.arange(N).reshape(1, N, 1), eidx_mask.shape)
        dst = dst[eidx_mask].reshape(1, -1)
        return jnp.concatenate([dst, src], 0).astype(jnp.int32)

    # ---- forward -------------------------------------------------------------
    def forward(self, batch, pretrain=False, mode='train', tau=1.0):
        S, X, Q, mask = batch['S'], batch['X'], batch['Q'], batch['mask']
        B, L = S.shape
        atom_N, atom_Ca, atom_C, atom_O = X[:, :, 0], X[:, :, 1], X[:, :, 2], X[:, :, 3]
        atoms = {'N': atom_N, 'Ca': atom_Ca, 'C': atom_C, 'O': atom_O}

        seq_k_eidx = self.get_seq_knearest(B, L)
        str_k_eidx = self.get_str_knearest(atom_Ca, mask)
        str_r_eidx_mask, str_r_eidx = self.get_r_ball_neighbors(atom_Ca, mask)

        mask_bool = (mask == 1)
        node_sel = lambda x: x[mask_bool]
        seq_k_mask = (mask[..., None] * gather_nodes(mask[..., None], seq_k_eidx)[..., 0]) == 1
        str_k_mask = (mask[..., None] * gather_nodes(mask[..., None], str_k_eidx)[..., 0]) == 1
        str_r_mask = str_r_eidx_mask
        seq_sel = lambda x: x[seq_k_mask]
        strk_sel = lambda x: x[str_k_mask]
        strr_sel = lambda x: x[str_r_mask]

        # ---- node features (117 = 12 angles + 6*16 rbf + 9 directions) -------
        node_seq_emb = node_sel(self.wo_esm[S])
        v_angles = node_sel(_dihedrals(X))
        v_dists = []
        for pair in ['Ca-N', 'Ca-C', 'Ca-O', 'N-C', 'N-O', 'O-C']:
            a, b = pair.split('-')
            v_dists.append(node_sel(_get_rbf(atoms[a], atoms[b])))
        v_dists = jnp.concatenate(v_dists, -1)
        v_directs = node_sel(_get_v_direct(X))
        node_feat = jnp.concatenate([v_angles, v_dists, v_directs], -1)

        # row-tiled Linear->BN->Linear->SiLU->BN->Linear, then fused gate/emb heads
        node_str_emb = pallas_embed_chain(node_feat, self.node_chain)
        node_cat = jnp.concatenate([node_seq_emb, node_str_emb], -1)
        node_emb = pallas_gate_emb(node_cat, self.gate_emb)

        # ---- edge features (272 = 16*16 rbf + 12 directions + 4 quaternion) ---
        seq_d, strk_d, strr_d = [], [], []
        for pair in ['Ca-Ca', 'Ca-C', 'C-Ca', 'Ca-N', 'N-Ca', 'Ca-O', 'O-Ca', 'C-C',
                     'C-N', 'N-C', 'C-O', 'O-C', 'N-N', 'N-O', 'O-N', 'O-O']:
            a, b = pair.split('-')
            seq_d.append(seq_sel(_get_rbf(atoms[a], atoms[b], seq_k_eidx)))
            strk_d.append(strk_sel(_get_rbf(atoms[a], atoms[b], str_k_eidx)))
            strr_d.append(strr_sel(_get_rbf(atoms[a], atoms[b], str_r_eidx)))
        seq_d, strk_d, strr_d = (jnp.concatenate(seq_d, -1),
                                 jnp.concatenate(strk_d, -1),
                                 jnp.concatenate(strr_d, -1))
        seq_dir, seq_ang = _get_e_direct_angle(X, seq_k_eidx, seq_sel)
        strk_dir, strk_ang = _get_e_direct_angle(X, str_k_eidx, strk_sel)
        strr_dir, strr_ang = _get_e_direct_angle(X, str_r_eidx, strr_sel)

        seq_k_emb = pallas_embed_chain(
            jnp.concatenate([seq_d, seq_dir, seq_ang], -1), self.seq_k_chain)
        str_k_emb = pallas_embed_chain(
            jnp.concatenate([strk_d, strk_dir, strk_ang], -1), self.str_k_chain)
        str_r_emb = pallas_embed_chain(
            jnp.concatenate([strr_d, strr_dir, strr_ang], -1), self.str_r_chain)

        seq_k_eidx_t = self.idx_transform(mask, seq_k_eidx, seq_k_mask)
        str_k_eidx_t = self.idx_transform(mask, str_k_eidx, str_k_mask)
        str_r_eidx_t = self.idx_transform(mask, str_r_eidx, str_r_mask)
        # consumed only by the (stubbed) graph encoder / predictor1
        del seq_k_emb, str_k_emb, str_r_emb, seq_k_eidx_t, str_k_eidx_t, str_r_eidx_t

        # TODO(synk): StructureEncoder definition not provided -> identity pass-through.
        # TODO(synk): predictor1 (9-layer StructureEncoder) not provided -> identity,
        # so pred_emb = token_emb + node_emb (computed inside the fused kernel).

        # Fused MeToken quantization + residual + predictor2 + log_softmax.
        # The reference forward hard-codes tau=0.0001 for self.metoken.
        token_emb, encoding_indices, pred_emb, log_probs = pallas_quantize_predict(
            node_emb, self.codebook_bf16_T, self.codebook_bf16, self.predictor2,
            tau=1e-4)

        batch.update({'Q': Q[mask_bool], 'mask': mask[mask_bool], 'S': S[mask_bool]})
        return {'log_probs': log_probs, 'codebook': self.codebook,
                'node_emb': node_emb, 'token_emb': token_emb,
                'pred_emb': pred_emb, 'token_index': encoding_indices}


# ================================ main ======================================

if __name__ == "__main__":
    key = jax.random.PRNGKey(0)
    k_param, k_X, k_S, k_Q = jax.random.split(key, 4)

    args = Args()
    B, L = 2, 16
    X = jax.random.normal(k_X, (B, L, 4, 3), jnp.float32) * 3.0
    S = jax.random.randint(k_S, (B, L), 0, ESM2_VOCAB)
    Q = jax.random.randint(k_Q, (B, L), 0, 26)
    mask = jnp.ones((B, L), jnp.float32).at[1, -3:].set(0.0)

    model = MeTokenModelPallas(args, k_param)
    out = model.forward({'S': S, 'X': X, 'Q': Q, 'mask': mask}, tau=1.0)

    jax.block_until_ready((out['log_probs'], out['token_emb'],
                           out['pred_emb'], out['token_index']))
    n_valid = int(mask.sum())
    assert out['log_probs'].shape == (n_valid, args.vocab)
    assert out['token_emb'].shape == (n_valid, args.hidden_dim)
    assert out['pred_emb'].shape == (n_valid, args.hidden_dim)
    assert out['token_index'].shape == (n_valid,)
    assert bool(jnp.all(jnp.isfinite(out['log_probs'])))
    print("KERNEL_OK")
</pallas_src>

<mosaic_0001>
module attributes {stable_mosaic.version = 11 : i64} {
  func.func @kernel(%arg0: i32, %arg1: memref<1024x117xbf16, #tpu.memory_space<vmem>>, %arg2: memref<117x32xbf16, #tpu.memory_space<vmem>>, %arg3: memref<1x32xf32, #tpu.memory_space<vmem>>, %arg4: memref<1024x32xbf16, #tpu.memory_space<vmem>>, %arg5: memref<1x1x32xf32, #tpu.memory_space<vmem>>, %arg6: memref<1x1x32xf32, #tpu.memory_space<vmem>>) attributes {dimension_semantics = [#tpu.dimension_semantics<parallel>], iteration_bounds = array<i64: 1>, scalar_prefetch = 0 : i64, scratch_operands = 0 : i64, tpu.core_type = #tpu.core_type<tc>, window_params = [{transform_indices = @transform_0, window_bounds = array<i64: 1024, 117>}, {pipeline_mode = #tpu.pipeline_mode<synchronous>, transform_indices = @transform_1, window_bounds = array<i64: 117, 32>}, {pipeline_mode = #tpu.pipeline_mode<synchronous>, transform_indices = @transform_2, window_bounds = array<i64: 1, 32>}, {transform_indices = @transform_3, window_bounds = array<i64: 1024, 32>}, {transform_indices = @transform_4, window_bounds = array<i64: 1, 1, 32>}, {transform_indices = @transform_5, window_bounds = array<i64: 1, 1, 32>}]} {
    %c0 = arith.constant 0 : index
    %c0_0 = arith.constant 0 : index
    %0 = vector.load %arg1[%c0, %c0_0] : memref<1024x117xbf16, #tpu.memory_space<vmem>>, vector<1024x117xbf16>
    %c0_1 = arith.constant 0 : index
    %c0_2 = arith.constant 0 : index
    %1 = vector.load %arg2[%c0_1, %c0_2] : memref<117x32xbf16, #tpu.memory_space<vmem>>, vector<117x32xbf16>
    %cst = arith.constant dense<0.000000e+00> : vector<1024x32xf32>
    %2 = tpu.matmul %0, %1, %cst {dimension_numbers = #tpu.dot_dimension_numbers<[1], [0], [0], [1], [0, 0, 1, 1], [], []>} : vector<1024x117xbf16>, vector<117x32xbf16>, vector<1024x32xf32> -> vector<1024x32xf32>
    %c0_3 = arith.constant 0 : index
    %c0_4 = arith.constant 0 : index
    %3 = vector.load %arg3[%c0_3, %c0_4] : memref<1x32xf32, #tpu.memory_space<vmem>>, vector<1x32xf32>
    %4 = vector.broadcast %3 : vector<1x32xf32> to vector<1024x32xf32>
    %5 = arith.addf %2, %4 : vector<1024x32xf32>
    %6 = arith.truncf %5 : vector<1024x32xf32> to vector<1024x32xbf16>
    %c0_5 = arith.constant 0 : index
    %c0_6 = arith.constant 0 : index
    %7 = vector.load %arg4[%c0_5, %c0_6] : memref<1024x32xbf16, #tpu.memory_space<vmem>>, vector<1024x32xbf16>
    tpu.vector_store %arg4[%c0_5, %c0_6], %6 {strides = array<i32>} : memref<1024x32xbf16, #tpu.memory_space<vmem>>, vector<1024x32xbf16>,
    %c1024_i32 = arith.constant 1024 : i32
    %8 = arith.muli %arg0, %c1024_i32 : i32
    %9 = tpu.iota {dimensions = array<i32: 0>} : vector<1024x1xi32>
    %10 = vector.broadcast %8 : i32 to vector<1024x1xi32>
    %11 = arith.addi %10, %9 : vector<1024x1xi32>
    %c29_i32 = arith.constant 29 : i32
    %12 = vector.broadcast %c29_i32 : i32 to vector<1024x1xi32>
    %13 = arith.cmpi slt, %11, %12 : vector<1024x1xi32>
    %cst_7 = arith.constant 0.000000e+00 : f32
    %14 = vector.shape_cast %13 : vector<1024x1xi1> to vector<1024x1xi1>
    %15 = vector.broadcast %14 : vector<1024x1xi1> to vector<1024x32xi1>
    %16 = vector.broadcast %cst_7 : f32 to vector<1024x32xf32>
    %17 = arith.select %15, %5, %16 : vector<1024x32xi1>, vector<1024x32xf32>
    %cst_8 = arith.constant dense<0.000000e+00> : vector<32xf32>
    %18 = vector.multi_reduction <add>, %17, %cst_8 [0] : vector<1024x32xf32> to vector<32xf32>
    %19 = vector.shape_cast %18 : vector<32xf32> to vector<1x32xf32>
    %c0_9 = arith.constant 0 : index
    %c0_10 = arith.constant 0 : index
    %c0_11 = arith.constant 0 : index
    %20 = vector.load %arg5[%c0_9, %c0_10, %c0_11] : memref<1x1x32xf32, #tpu.memory_space<vmem>>, vector<1x1x32xf32>
    %21 = vector.shape_cast %20 : vector<1x1x32xf32> to vector<1x32xf32>
    %22 = vector.shape_cast %19 : vector<1x32xf32> to vector<1x1x32xf32>
    tpu.vector_store %arg5[%c0_9, %c0_10, %c0_11], %22 {strides = array<i32>} : memref<1x1x32xf32, #tpu.memory_space<vmem>>, vector<1x1x32xf32>,
    %23 = arith.mulf %17, %17 : vector<1024x32xf32>
    %cst_12 = arith.constant dense<0.000000e+00> : vector<32xf32>
    %24 = vector.multi_reduction <add>, %23, %cst_12 [0] : vector<1024x32xf32> to vector<32xf32>
    %25 = vector.shape_cast %24 : vector<32xf32> to vector<1x32xf32>
    %c0_13 = arith.constant 0 : index
    %c0_14 = arith.constant 0 : index
    %c0_15 = arith.constant 0 : index
    %26 = vector.load %arg6[%c0_13, %c0_14, %c0_15] : memref<1x1x32xf32, #tpu.memory_space<vmem>>, vector<1x1x32xf32>
    %27 = vector.shape_cast %26 : vector<1x1x32xf32> to vector<1x32xf32>
    %28 = vector.shape_cast %25 : vector<1x32xf32> to vector<1x1x32xf32>
    tpu.vector_store %arg6[%c0_13, %c0_14, %c0_15], %28 {strides = array<i32>} : memref<1x1x32xf32, #tpu.memory_space<vmem>>, vector<1x1x32xf32>,
    return
  }
  func.func @transform_0(%arg0: i32) -> (i32, i32) {
    %c0_i32 = arith.constant 0 : i32
    %c0_i32_0 = arith.constant 0 : i32
    return %arg0, %c0_i32 : i32, i32
  }
  func.func @transform_1(%arg0: i32) -> (i32, i32) {
    %c0_i32 = arith.constant 0 : i32
    %c0_i32_0 = arith.constant 0 : i32
    %c0_i32_1 = arith.constant 0 : i32
    return %c0_i32, %c0_i32_0 : i32, i32
  }
  func.func @transform_2(%arg0: i32) -> (i32, i32) {
    %c0_i32 = arith.constant 0 : i32
    %c0_i32_0 = arith.constant 0 : i32
    %c0_i32_1 = arith.constant 0 : i32
    return %c0_i32, %c0_i32_0 : i32, i32
  }
  func.func @transform_3(%arg0: i32) -> (i32, i32) {
    %c0_i32 = arith.constant 0 : i32
    %c0_i32_0 = arith.constant 0 : i32
    return %arg0, %c0_i32 : i32, i32
  }
  func.func @transform_4(%arg0: i32) -> (i32, i32, i32) {
    %c0_i32 = arith.constant 0 : i32
    %c0_i32_0 = arith.constant 0 : i32
    %c0_i32_1 = arith.constant 0 : i32
    return %arg0, %c0_i32, %c0_i32_0 : i32, i32, i32
  }
  func.func @transform_5(%arg0: i32) -> (i32, i32, i32) {
    %c0_i32 = arith.constant 0 : i32
    %c0_i32_0 = arith.constant 0 : i32
    %c0_i32_1 = arith.constant 0 : i32
    return %arg0, %c0_i32, %c0_i32_0 : i32, i32, i32
  }
}

</mosaic_0001>

<bundles_post_ra>
// kernel: tpu_custom_call.1
= control target key start
LH: loop header
LB: loop body
LE: loop exit
PB: predicated region body
PF: predicated region fallthrough
CT: control target
= control target key end

     0   :  { %11 = vsyncpa [#allocation3], 0  ;;  %s4747_s0 = inlined_call_operand.vmem [shape: bf16[29,117], index: 0, kind: input, shape index: {}]   ;;  %s4748_s1 = inlined_call_operand.vmem [shape: bf16[117,32], index: 1, kind: input, shape index: {}]   ;;  %s4749_s2 = inlined_call_operand.vmem [shape: f32[1,32], index: 2, kind: input, shape index: {}]   ;;  %s4750_s3 = inlined_call_operand.hbm [shape: bf16[29,32], index: 3, kind: output, shape index: {0}]   ;;  %s4751_s4 = inlined_call_operand.hbm [shape: f32[1,1,32], index: 4, kind: output, shape index: {1}]   ;;  %s4752_s5 = inlined_call_operand.hbm [shape: f32[1,1,32], index: 5, kind: output, shape index: {2}]  }
   0x1   :  { %12 = vsyncpa [#allocation5], 0  ;;  %vm728_vm0 = vcmask 1041408   ;;  %vm729_vm1 = vcmask 1042432   ;;  %v4157_v1 = vmov 65535   ;;  %v4021_v5 = vld [vmem:[%s4748_s1 + $0x30] sm:$0xff]  }
   0x2   :  { %v4020_v0 = vld [vmem:[%s4748_s1 + $0x38] ss:$0 sps:$4 sm:$0x77]   ;;  %v730_v2 = vsel %vm728_vm0, 4294967295, %v4157_v1  ;;  %v4022_v6 = vld [vmem:[%s4748_s1 + $0x28] sm:$0xff]   ;;  %v4028_v7 = vld [vmem:[%s4747_s0] sm:$0xff]  }
   0x3   :  { %v731_v3 = vsel %vm729_vm1, %v730_v2, 0  ;;  %vm535_vm2 = vcmask 957440   ;;  %v4029_v8 = vld [vmem:[%s4747_s0 + $0x100] sm:$0xff]   ;;  %v4024_v10 = vld [vmem:[%s4748_s1 + $0x18] sm:$0xff]   ;;  %v4025_v11 = vld [vmem:[%s4748_s1 + $0x10] sm:$0xff]   ;;  %vm1792_vm3 = vcmask 257024  }
   0x4   :  { %v733_v4 = vand.u32 %v4020_v0, %v731_v3  ;;  %v4023_v9 = vld [vmem:[%s4748_s1 + $0x20] sm:$0xff]   ;;  %3870 = vmatprep.mubr.msk.bf16.mxu0 %vm535_vm2, %v4028_v7  ;;  %3934 = vmatprep.mubr.msk.bf16.mxu1 %vm535_vm2, %v4029_v8  ;;  %v4026_v12 = vld [vmem:[%s4748_s1 + $0x8] sm:$0xff]   ;;  %v4032_v16 = vld [vmem:[%s4747_s0 + $0x10] sm:$0xff]   ;;  %vm2692_vm4 = vcmask 261120   ;;  %vm2954_vm6 = vcmask 253952  }
   0x5   :  { %v4027_v13 = vld [vmem:[%s4748_s1] sm:$0xff]   ;;  %v4030_v14 = vld [vmem:[%s4747_s0 + $0x8] sm:$0xff]   ;;  %v4033_v17 = vld [vmem:[%s4747_s0 + $0x110] sm:$0xff]  }
   0x6   :  { %3854 = vmatprep.subr.bf16.mxu0 %v733_v4  ;;  %3998 = vmatprep.subr.bf16.mxu1 %v733_v4  ;;  %v4031_v15 = vld [vmem:[%s4747_s0 + $0x108] sm:$0xff]   ;;  %v4034_v18 = vld [vmem:[%s4747_s0 + $0x18] sm:$0xff]   ;;  %v4036_v20 = vld [vmem:[%s4747_s0 + $0x20] sm:$0xff]  }
   0x7   :  { %3855 = vmatpush3.bf16.msra.mxu0 %v733_v4  ;;  %4006 = vmatpush3.bf16.msra.mxu1 %v733_v4  ;;  %v4035_v19 = vld [vmem:[%s4747_s0 + $0x118] sm:$0xff]   ;;  %v4037_v21 = vld [vmem:[%s4747_s0 + $0x120] sm:$0xff]   ;;  %v4038_v22 = vld [vmem:[%s4747_s0 + $0x28] sm:$0xff]  }
   0x8   :  { %3856 = vmatprep.subr.bf16.mxu0 %v4021_v5  ;;  %3999 = vmatprep.subr.bf16.mxu1 %v4021_v5  ;;  %v4039_v23 = vld [vmem:[%s4747_s0 + $0x128] sm:$0xff]   ;;  %v4040_v24 = vld [vmem:[%s4747_s0 + $0x30] sm:$0xff]   ;;  %v4042_v26 = vld [vmem:[%s4747_s0 + $0x38] sm:$0xff]  }
   0x9   :  { %v4041_v25 = vld [vmem:[%s4747_s0 + $0x130] sm:$0xff]   ;;  %v4043_v27 = vld [vmem:[%s4747_s0 + $0x138] sm:$0xff]   ;;  %v4044_v28 = vld [vmem:[%s4747_s0 + $0x40] sm:$0xff]  }
   0xa   :  { %v4045_v29 = vld [vmem:[%s4747_s0 + $0x140] sm:$0xff]   ;;  %v4046_v30 = vld [vmem:[%s4747_s0 + $0x48] sm:$0xff]   ;;  %v4048_v32 = vld [vmem:[%s4747_s0 + $0x50] sm:$0xff]  }
   0xb   :  { %3857 = vmatpush3.bf16.msra.mxu0 %v4021_v5  ;;  %4007 = vmatpush3.bf16.msra.mxu1 %v4021_v5  ;;  %v4047_v31 = vld [vmem:[%s4747_s0 + $0x148] sm:$0xff]   ;;  %v4049_v33 = vld [vmem:[%s4747_s0 + $0x150] sm:$0xff]   ;;  %v4050_v34 = vld [vmem:[%s4747_s0 + $0x58] sm:$0xff]  }
   0xc   :  { %3858 = vmatprep.subr.bf16.mxu0 %v4022_v6  ;;  %4000 = vmatprep.subr.bf16.mxu1 %v4022_v6  ;;  %v4051_v35 = vld [vmem:[%s4747_s0 + $0x158] sm:$0xff]   ;;  %v4052_v36 = vld [vmem:[%s4747_s0 + $0x60] sm:$0xff]   ;;  %v4054_v38 = vld [vmem:[%s4747_s0 + $0x68] sm:$0xff]  }
   0xd   :  { %v4053_v37 = vld [vmem:[%s4747_s0 + $0x160] sm:$0xff]   ;;  %v4055_v39 = vld [vmem:[%s4747_s0 + $0x168] sm:$0xff]   ;;  %v4056_v40 = vld [vmem:[%s4747_s0 + $0x70] sm:$0xff]  }
   0xe   :  { %v4057_v41 = vld [vmem:[%s4747_s0 + $0x170] sm:$0xff]   ;;  %v4058_v42 = vld [vmem:[%s4747_s0 + $0x78] sm:$0xff]   ;;  %v4060_v44 = vld [vmem:[%s4747_s0 + $0x80] sm:$0xff]  }
   0xf   :  { %3859 = vmatpush3.bf16.msra.mxu0 %v4022_v6  ;;  %4008 = vmatpush3.bf16.msra.mxu1 %v4022_v6  ;;  %v4059_v43 = vld [vmem:[%s4747_s0 + $0x178] sm:$0xff]   ;;  %v4061_v45 = vld [vmem:[%s4747_s0 + $0x180] sm:$0xff]   ;;  %v4062_v46 = vld [vmem:[%s4747_s0 + $0x88] sm:$0xff]  }
  0x10   :  { %3860 = vmatprep.subr.bf16.mxu0 %v4023_v9  ;;  %4001 = vmatprep.subr.bf16.mxu1 %v4023_v9  ;;  %v4063_v47 = vld [vmem:[%s4747_s0 + $0x188] sm:$0xff]   ;;  %v4064_v48 = vld [vmem:[%s4747_s0 + $0x90] sm:$0xff]   ;;  %v4066_v50 = vld [vmem:[%s4747_s0 + $0x98] sm:$0xff]  }
  0x11   :  { %v4065_v49 = vld [vmem:[%s4747_s0 + $0x190] sm:$0xff]   ;;  %v4067_v51 = vld [vmem:[%s4747_s0 + $0x198] sm:$0xff]   ;;  %v4068_v52 = vld [vmem:[%s4747_s0 + $0xa0] sm:$0xff]  }
  0x12   :  { %v4069_v53 = vld [vmem:[%s4747_s0 + $0x1a0] sm:$0xff]   ;;  %v4070_v54 = vld [vmem:[%s4747_s0 + $0xa8] sm:$0xff]   ;;  %v4072_v56 = vld [vmem:[%s4747_s0 + $0xb0] sm:$0xff]  }
  0x13   :  { %3861 = vmatpush3.bf16.msra.mxu0 %v4023_v9  ;;  %4009 = vmatpush3.bf16.msra.mxu1 %v4023_v9  ;;  %v4071_v55 = vld [vmem:[%s4747_s0 + $0x1a8] sm:$0xff]   ;;  %v4073_v57 = vld [vmem:[%s4747_s0 + $0x1b0] sm:$0xff]   ;;  %v4074_v58 = vld [vmem:[%s4747_s0 + $0xb8] sm:$0xff]  }
  0x14   :  { %3862 = vmatprep.subr.bf16.mxu0 %v4024_v10  ;;  %4002 = vmatprep.subr.bf16.mxu1 %v4024_v10  ;;  %v4075_v59 = vld [vmem:[%s4747_s0 + $0x1b8] sm:$0xff]   ;;  %v4076_v60 = vld [vmem:[%s4747_s0 + $0xc0] sm:$0xff]   ;;  %v4078_v62 = vld [vmem:[%s4747_s0 + $0xc8] sm:$0xff]  }
  0x15   :  { %v4077_v61 = vld [vmem:[%s4747_s0 + $0x1c0] sm:$0xff]   ;;  %v4079_v63 = vld [vmem:[%s4747_s0 + $0x1c8] sm:$0xff]   ;;  %v4080_v0 = vld [vmem:[%s4747_s0 + $0xd0] sm:$0xff]  }
  0x16   :  { %v4081_v1 = vld [vmem:[%s4747_s0 + $0x1d0] sm:$0xff]   ;;  %v4082_v2 = vld [vmem:[%s4747_s0 + $0xd8] sm:$0xff]   ;;  %v4084_v4 = vld [vmem:[%s4747_s0 + $0xe0] sm:$0xff]  }
  0x17   :  { %3863 = vmatpush3.bf16.msra.mxu0 %v4024_v10  ;;  %4010 = vmatpush3.bf16.msra.mxu1 %v4024_v10  ;;  %v4083_v3 = vld [vmem:[%s4747_s0 + $0x1d8] sm:$0xff]   ;;  %v4085_v5 = vld [vmem:[%s4747_s0 + $0x1e0] sm:$0xff]   ;;  %v4086_v6 = vld [vmem:[%s4747_s0 + $0xe8] sm:$0xff]  }
  0x18   :  { %3864 = vmatprep.subr.bf16.mxu0 %v4025_v11  ;;  %4003 = vmatprep.subr.bf16.mxu1 %v4025_v11  ;;  %v4087_v7 = vld [vmem:[%s4747_s0 + $0x1e8] sm:$0xff]   ;;  %v4088_v8 = vld [vmem:[%s4747_s0 + $0xf0] sm:$0xff]   ;;  %v4090_v10 = vld [vmem:[%s4747_s0 + $0xf8] sm:$0xff]  }
  0x19   :  { %v4089_v9 = vld [vmem:[%s4747_s0 + $0x1f0] sm:$0xff]  }
  0x1b   :  { %3865 = vmatpush3.bf16.msra.mxu0 %v4025_v11  ;;  %4011 = vmatpush3.bf16.msra.mxu1 %v4025_v11  ;;  %v4091_v11 = vld [vmem:[%s4747_s0 + $0x1f8] sm:$0xff]  }
  0x1c   :  { %3866 = vmatprep.subr.bf16.mxu0 %v4026_v12  ;;  %4004 = vmatprep.subr.bf16.mxu1 %v4026_v12 }
  0x1f   :  { %3867 = vmatpush3.bf16.msra.mxu0 %v4026_v12  ;;  %4012 = vmatpush3.bf16.msra.mxu1 %v4026_v12  ;;  %v1922_v12 = vlaneseq }
  0x20   :  { %3868 = vmatprep.subr.bf16.mxu0 %v4027_v13  ;;  %4005 = vmatprep.subr.bf16.mxu1 %v4027_v13 }
  0x23   :  { %3869 = vmatpush3.bf16.msra.mxu0 %v4027_v13  ;;  %4013 = vmatpush3.bf16.msra.mxu1 %v4027_v13  ;;  %v1923_v13 = vshrl.u32 %v1922_v12, 7 }
  0x26   :  { %3871 = vmatmul.mubr.msk.bf16.vlgmr.msra.gmra.mxu0 %vm535_vm2, %v4030_v14  ;;  %3935 = vmatmul.mubr.msk.bf16.vlgmr.msra.gmra.mxu1 %vm535_vm2, %v4031_v15  ;;  %v4476_v14 = vld [vmem:[%s4749_s2] ss:$0 sm:$0xff] }
  0x27   :  { %3874 = vmatprep.mubr.msk.bf16.mxu0 %vm535_vm2, %v4032_v16  ;;  %3938 = vmatprep.mubr.msk.bf16.mxu1 %vm535_vm2, %v4033_v17  ;;  %v1926_v17 = vadd.s32 24, %v1923_v13 }
  0x29   :  { %vm2183_vm5 = vcmp.lt.s32.totalorder %v1926_v17, 29 }
  0x2e   :  { %3875 = vmatmul.mubr.msk.bf16.gmra.mxu0 %vm535_vm2, %v4034_v18  ;;  %3939 = vmatmul.mubr.msk.bf16.gmra.mxu1 %vm535_vm2, %v4035_v19 }
  0x2f   :  { %3878 = vmatprep.mubr.msk.bf16.mxu0 %vm535_vm2, %v4036_v20  ;;  %3942 = vmatprep.mubr.msk.bf16.mxu1 %vm535_vm2, %v4037_v21 }
  0x36   :  { %3879 = vmatmul.mubr.msk.bf16.gmra.mxu0 %vm535_vm2, %v4038_v22  ;;  %3943 = vmatmul.mubr.msk.bf16.gmra.mxu1 %vm535_vm2, %v4039_v23 }
  0x37   :  { %3882 = vmatprep.mubr.msk.bf16.mxu0 %vm535_vm2, %v4040_v24  ;;  %3946 = vmatprep.mubr.msk.bf16.mxu1 %vm535_vm2, %v4041_v25 }
  0x3e   :  { %3883 = vmatmul.mubr.msk.bf16.gmra.mxu0 %vm535_vm2, %v4042_v26  ;;  %3947 = vmatmul.mubr.msk.bf16.gmra.mxu1 %vm535_vm2, %v4043_v27 }
  0x3f   :  { %3886 = vmatprep.mubr.msk.bf16.mxu0 %vm535_vm2, %v4044_v28  ;;  %3950 = vmatprep.mubr.msk.bf16.mxu1 %vm535_vm2, %v4045_v29 }
  0x46   :  { %3887 = vmatmul.mubr.msk.bf16.gmra.mxu0 %vm535_vm2, %v4046_v30  ;;  %3951 = vmatmul.mubr.msk.bf16.gmra.mxu1 %vm535_vm2, %v4047_v31 }
  0x47   :  { %3890 = vmatprep.mubr.msk.bf16.mxu0 %vm535_vm2, %v4048_v32  ;;  %3954 = vmatprep.mubr.msk.bf16.mxu1 %vm535_vm2, %v4049_v33 }
  0x4e   :  { %3891 = vmatmul.mubr.msk.bf16.gmra.mxu0 %vm535_vm2, %v4050_v34  ;;  %3955 = vmatmul.mubr.msk.bf16.gmra.mxu1 %vm535_vm2, %v4051_v35 }
  0x4f   :  { %3894 = vmatprep.mubr.msk.bf16.mxu0 %vm535_vm2, %v4052_v36  ;;  %3958 = vmatprep.mubr.msk.bf16.mxu1 %vm535_vm2, %v4053_v37 }
  0x56   :  { %3895 = vmatmul.mubr.msk.bf16.gmra.mxu0 %vm535_vm2, %v4054_v38  ;;  %3959 = vmatmul.mubr.msk.bf16.gmra.mxu1 %vm535_vm2, %v4055_v39 }
  0x57   :  { %3898 = vmatprep.mubr.msk.bf16.mxu0 %vm535_vm2, %v4056_v40  ;;  %3962 = vmatprep.mubr.msk.bf16.mxu1 %vm535_vm2, %v4057_v41 }
  0x5e   :  { %3899 = vmatmul.mubr.msk.bf16.gmra.mxu0 %vm535_vm2, %v4058_v42  ;;  %3963 = vmatmul.mubr.msk.bf16.gmra.mxu1 %vm535_vm2, %v4059_v43 }
  0x5f   :  { %3902 = vmatprep.mubr.msk.bf16.mxu0 %vm535_vm2, %v4060_v44  ;;  %3966 = vmatprep.mubr.msk.bf16.mxu1 %vm535_vm2, %v4061_v45 }
  0x66   :  { %3903 = vmatmul.mubr.msk.bf16.gmra.mxu0 %vm535_vm2, %v4062_v46  ;;  %3967 = vmatmul.mubr.msk.bf16.gmra.mxu1 %vm535_vm2, %v4063_v47 }
  0x67   :  { %3906 = vmatprep.mubr.msk.bf16.mxu0 %vm535_vm2, %v4064_v48  ;;  %3970 = vmatprep.mubr.msk.bf16.mxu1 %vm535_vm2, %v4065_v49 }
  0x6e   :  { %3907 = vmatmul.mubr.msk.bf16.gmra.mxu0 %vm535_vm2, %v4066_v50  ;;  %3971 = vmatmul.mubr.msk.bf16.gmra.mxu1 %vm535_vm2, %v4067_v51 }
  0x6f   :  { %3910 = vmatprep.mubr.msk.bf16.mxu0 %vm535_vm2, %v4068_v52  ;;  %3974 = vmatprep.mubr.msk.bf16.mxu1 %vm535_vm2, %v4069_v53 }
  0x76   :  { %3911 = vmatmul.mubr.msk.bf16.gmra.mxu0 %vm535_vm2, %v4070_v54  ;;  %3975 = vmatmul.mubr.msk.bf16.gmra.mxu1 %vm535_vm2, %v4071_v55 }
  0x77   :  { %3914 = vmatprep.mubr.msk.bf16.mxu0 %vm535_vm2, %v4072_v56  ;;  %3978 = vmatprep.mubr.msk.bf16.mxu1 %vm535_vm2, %v4073_v57 }
  0x7e   :  { %3915 = vmatmul.mubr.msk.bf16.gmra.mxu0 %vm535_vm2, %v4074_v58  ;;  %3979 = vmatmul.mubr.msk.bf16.gmra.mxu1 %vm535_vm2, %v4075_v59 }
  0x7f   :  { %3918 = vmatprep.mubr.msk.bf16.mxu0 %vm535_vm2, %v4076_v60  ;;  %3982 = vmatprep.mubr.msk.bf16.mxu1 %vm535_vm2, %v4077_v61 }
  0x86   :  { %3919 = vmatmul.mubr.msk.bf16.gmra.mxu0 %vm535_vm2, %v4078_v62  ;;  %3983 = vmatmul.mubr.msk.bf16.gmra.mxu1 %vm535_vm2, %v4079_v63 }
  0x87   :  { %3922 = vmatprep.mubr.msk.bf16.mxu0 %vm535_vm2, %v4080_v0  ;;  %3986 = vmatprep.mubr.msk.bf16.mxu1 %vm535_vm2, %v4081_v1 }
  0x8e   :  { %3923 = vmatmul.mubr.msk.bf16.gmra.mxu0 %vm535_vm2, %v4082_v2  ;;  %3987 = vmatmul.mubr.msk.bf16.gmra.mxu1 %vm535_vm2, %v4083_v3 }
  0x8f   :  { %3926 = vmatprep.mubr.msk.bf16.mxu0 %vm535_vm2, %v4084_v4  ;;  %3990 = vmatprep.mubr.msk.bf16.mxu1 %vm535_vm2, %v4085_v5 }
  0x96   :  { %3927 = vmatmul.mubr.msk.bf16.gmra.mxu0 %vm535_vm2, %v4086_v6  ;;  %3991 = vmatmul.mubr.msk.bf16.gmra.mxu1 %vm535_vm2, %v4087_v7 }
  0x97   :  { %3930 = vmatprep.mubr.msk.bf16.mxu0 %vm535_vm2, %v4088_v8  ;;  %3994 = vmatprep.mubr.msk.bf16.mxu1 %vm535_vm2, %v4089_v9 }
  0x9e   :  { %3931 = vmatmul.mubr.msk.bf16.gmra.mxu0 %vm535_vm2, %v4090_v10  ;;  %3995 = vmatmul.mubr.msk.bf16.gmra.mxu1 %vm535_vm2, %v4091_v11 }
  0xe6   :  { %v3872_v15 = vpop.f32.mrf.mxu0  ;;  %v3936_v16 = vpop.f32.mrf.mxu1 }
  0xe7   :  { %v778_v18 = vadd.f32 %v3872_v15, %v4476_v14  ;;  %v1034_v19 = vadd.f32 %v3936_v16, %v4476_v14 }
  0xe8   :  { %v769_v20 = vpop.f32.mrf.mxu0  ;;  %v1025_v21 = vpop.f32.mrf.mxu1 }
  0xe9   :  { %v3656_v22 = vpack.c.bf16 %v778_v18, %v778_v18  ;;  %v3720_v23 = vpack.c.bf16 %v1034_v19, %v1034_v19  ;;  %v2958_v24 = vmul.f32 %v778_v18, %v778_v18  ;;  %v770_v25 = vadd.f32 %v4476_v14, %v769_v20 }
  0xea   :  { %v1026_v26 = vadd.f32 %v4476_v14, %v1025_v21  ;;  %v3873_v27 = vpop.f32.mrf.mxu0  ;;  %v3937_v28 = vpop.f32.mrf.mxu1  ;;  %v2696_v31 = vsel %vm2692_vm4, %v778_v18, 0.0 }
  0xeb   :  { %1795 = vst.msk [vmem:[#allocation2 + $0x8] sm:$0xf] %vm1792_vm3, %v3656_v22  ;;  %1859 = vst.msk [vmem:[#allocation2 + $0x108] sm:$0xf] %vm1792_vm3, %v3720_v23  ;;  %v781_v29 = vadd.f32 %v3873_v27, %v4476_v14  ;;  %v1037_v30 = vadd.f32 %v3937_v28, %v4476_v14  ;;  %v3654_v32 = vpack.c.bf16 %v770_v25, %v770_v25  ;;  %v3087_v41 = vsel %vm2692_vm4, %v2958_v24, 0.0 }
  0xec   :  { %v2956_v33 = vmul.f32 %v770_v25, %v770_v25  ;;  %v3718_v34 = vpack.c.bf16 %v1026_v26, %v1026_v26  ;;  %v772_v35 = vpop.f32.mrf.mxu0  ;;  %v1028_v36 = vpop.f32.mrf.mxu1  ;;  %v2693_v42 = vsel %vm2692_vm4, %v770_v25, 0.0 }
  0xed   :  { %v3657_v37 = vpack.c.bf16 %v781_v29, %v781_v29  ;;  %v2567_v38 = vsel %vm2183_vm5, %v781_v29, 0.0  ;;  %v3721_v39 = vpack.c.bf16 %v1037_v30, %v1037_v30  ;;  %v773_v40 = vadd.f32 %v4476_v14, %v772_v35  ;;  %1793 = vst.msk [vmem:[#allocation2] sm:$0xf] %vm1792_vm3, %v3654_v32 }
  0xee   :  { %v3084_v43 = vsel %vm2692_vm4, %v2956_v33, 0.0  ;;  %1857 = vst.msk [vmem:[#allocation2 + $0x100] sm:$0xf] %vm1792_vm3, %v3718_v34  ;;  %v1029_v44 = vadd.f32 %v4476_v14, %v1028_v36  ;;  %v3876_v45 = vpop.f32.mrf.mxu0  ;;  %v3940_v46 = vpop.f32.mrf.mxu1  ;;  %v2959_v51 = vmul.f32 %v2567_v38, %v2567_v38  ;;  %v2698_v61 = vsel %vm2692_vm4, %v2567_v38, 0.0 }
  0xef   :  { %1796 = vst.msk [vmem:[#allocation2 + $0xc] sm:$0xf] %vm1792_vm3, %v3657_v37  ;;  %1860 = vst.msk [vmem:[#allocation2 + $0x10c] sm:$0xf] %vm1792_vm3, %v3721_v39  ;;  %v3655_v47 = vpack.c.bf16 %v773_v40, %v773_v40  ;;  %v2694_v48 = vsel %vm2692_vm4, %v773_v40, 0.0  ;;  %v2957_v49 = vmul.f32 %v773_v40, %v773_v40  ;;  %v794_v50 = vadd.f32 %v3876_v45, %v4476_v14 }
  0xf0   :  { %v2695_v52 = vadd.f32 %v2694_v48, %v2693_v42  ;;  %v3719_v53 = vpack.c.bf16 %v1029_v44, %v1029_v44  ;;  %v1050_v54 = vadd.f32 %v3940_v46, %v4476_v14  ;;  %v785_v55 = vpop.f32.mrf.mxu0  ;;  %v1041_v56 = vpop.f32.mrf.mxu1  ;;  %v3089_v7 = vsel %vm2692_vm4, %v2959_v51, 0.0 }
  0xf1   :  { %1794 = vst.msk [vmem:[#allocation2 + $0x4] sm:$0xf] %vm1792_vm3, %v3655_v47  ;;  %v3085_v57 = vsel %vm2692_vm4, %v2957_v49, 0.0  ;;  %v3660_v58 = vpack.c.bf16 %v794_v50, %v794_v50  ;;  %v786_v59 = vadd.f32 %v4476_v14, %v785_v55  ;;  %v1042_v60 = vadd.f32 %v4476_v14, %v1041_v56 }
  0xf2   :  { %v2697_v62 = vadd.f32 %v2696_v31, %v2695_v52  ;;  %v3086_v63 = vadd.f32 %v3085_v57, %v3084_v43  ;;  %1858 = vst.msk [vmem:[#allocation2 + $0x104] sm:$0xf] %vm1792_vm3, %v3719_v53  ;;  %v3724_v0 = vpack.c.bf16 %v1050_v54, %v1050_v54  ;;  %v3877_v1 = vpop.f32.mrf.mxu0  ;;  %v3941_v2 = vpop.f32.mrf.mxu1 }
  0xf3   :  { %1799 = vst.msk [vmem:[#allocation2 + $0x18] sm:$0xf] %vm1792_vm3, %v3660_v58  ;;  %v3658_v3 = vpack.c.bf16 %v786_v59, %v786_v59  ;;  %v3722_v4 = vpack.c.bf16 %v1042_v60, %v1042_v60  ;;  %v797_v5 = vadd.f32 %v3877_v1, %v4476_v14  ;;  %v1053_v6 = vadd.f32 %v3941_v2, %v4476_v14 }
  0xf4   :  { %v2699_v8 = vadd.f32 %v2698_v61, %v2697_v62  ;;  %v3088_v9 = vadd.f32 %v3087_v41, %v3086_v63  ;;  %1863 = vst.msk [vmem:[#allocation2 + $0x118] sm:$0xf] %vm1792_vm3, %v3724_v0  ;;  %v788_v10 = vpop.f32.mrf.mxu0  ;;  %v1044_v11 = vpop.f32.mrf.mxu1 }
  0xf5   :  { %1797 = vst.msk [vmem:[#allocation2 + $0x10] sm:$0xf] %vm1792_vm3, %v3658_v3  ;;  %1861 = vst.msk [vmem:[#allocation2 + $0x110] sm:$0xf] %vm1792_vm3, %v3722_v4  ;;  %v3661_v12 = vpack.c.bf16 %v797_v5, %v797_v5  ;;  %v3725_v13 = vpack.c.bf16 %v1053_v6, %v1053_v6  ;;  %v789_v15 = vadd.f32 %v4476_v14, %v788_v10 }
  0xf6   :  { %v1045_v16 = vadd.f32 %v4476_v14, %v1044_v11  ;;  %v2948_v17 = vrot.slane %v2699_v8, 4  ;;  %v3090_v18 = vadd.f32 %v3089_v7, %v3088_v9  ;;  %v3880_v19 = vpop.f32.mrf.mxu0  ;;  %v3944_v20 = vpop.f32.mrf.mxu1 }
  0xf7   :  { %1800 = vst.msk [vmem:[#allocation2 + $0x1c] sm:$0xf] %vm1792_vm3, %v3661_v12  ;;  %1864 = vst.msk [vmem:[#allocation2 + $0x11c] sm:$0xf] %vm1792_vm3, %v3725_v13  ;;  %v3659_v21 = vpack.c.bf16 %v789_v15, %v789_v15  ;;  %v810_v23 = vadd.f32 %v3880_v19, %v4476_v14  ;;  %v1066_v24 = vadd.f32 %v3944_v20, %v4476_v14 }
  0xf8   :  { %v3723_v22 = vpack.c.bf16 %v1045_v16, %v1045_v16  ;;  %v2949_v25 = vadd.f32 %v2948_v17, %v2699_v8  ;;  %v3339_v26 = vrot.slane %v3090_v18, 4  ;;  %v801_v27 = vpop.f32.mrf.mxu0  ;;  %v1057_v28 = vpop.f32.mrf.mxu1 }
  0xf9   :  { %1798 = vst.msk [vmem:[#allocation2 + $0x14] sm:$0xf] %vm1792_vm3, %v3659_v21  ;;  %v3664_v29 = vpack.c.bf16 %v810_v23, %v810_v23  ;;  %v3728_v30 = vpack.c.bf16 %v1066_v24, %v1066_v24  ;;  %v802_v31 = vadd.f32 %v4476_v14, %v801_v27  ;;  %v1058_v32 = vadd.f32 %v4476_v14, %v1057_v28 }
  0xfa   :  { %1862 = vst.msk [vmem:[#allocation2 + $0x114] sm:$0xf] %vm1792_vm3, %v3723_v22  ;;  %v2950_v33 = vrot.slane %v2949_v25, 2  ;;  %v3340_v34 = vadd.f32 %v3339_v26, %v3090_v18  ;;  %v3881_v35 = vpop.f32.mrf.mxu0  ;;  %v3945_v36 = vpop.f32.mrf.mxu1 }
  0xfb   :  { %1803 = vst.msk [vmem:[#allocation2 + $0x28] sm:$0xf] %vm1792_vm3, %v3664_v29  ;;  %1867 = vst.msk [vmem:[#allocation2 + $0x128] sm:$0xf] %vm1792_vm3, %v3728_v30  ;;  %v3662_v37 = vpack.c.bf16 %v802_v31, %v802_v31  ;;  %v3726_v38 = vpack.c.bf16 %v1058_v32, %v1058_v32  ;;  %v813_v39 = vadd.f32 %v3881_v35, %v4476_v14 }
  0xfc   :  { %v1069_v40 = vadd.f32 %v3945_v36, %v4476_v14  ;;  %v2951_v41 = vadd.f32 %v2950_v33, %v2949_v25  ;;  %v3341_v42 = vrot.slane %v3340_v34, 2  ;;  %v804_v43 = vpop.f32.mrf.mxu0  ;;  %v1060_v44 = vpop.f32.mrf.mxu1 }
  0xfd   :  { %1801 = vst.msk [vmem:[#allocation2 + $0x20] sm:$0xf] %vm1792_vm3, %v3662_v37  ;;  %1865 = vst.msk [vmem:[#allocation2 + $0x120] sm:$0xf] %vm1792_vm3, %v3726_v38  ;;  %v3665_v45 = vpack.c.bf16 %v813_v39, %v813_v39  ;;  %v805_v47 = vadd.f32 %v4476_v14, %v804_v43  ;;  %v1061_v48 = vadd.f32 %v4476_v14, %v1060_v44 }
  0xfe   :  { %v3729_v46 = vpack.c.bf16 %v1069_v40, %v1069_v40  ;;  %v2952_v49 = vrot.slane %v2951_v41, 1  ;;  %v3342_v50 = vadd.f32 %v3341_v42, %v3340_v34  ;;  %v3884_v51 = vpop.f32.mrf.mxu0  ;;  %v3948_v52 = vpop.f32.mrf.mxu1 }
  0xff   :  { %1804 = vst.msk [vmem:[#allocation2 + $0x2c] sm:$0xf] %vm1792_vm3, %v3665_v45  ;;  %v3663_v53 = vpack.c.bf16 %v805_v47, %v805_v47  ;;  %v3727_v54 = vpack.c.bf16 %v1061_v48, %v1061_v48  ;;  %v826_v55 = vadd.f32 %v3884_v51, %v4476_v14  ;;  %v1082_v56 = vadd.f32 %v3948_v52, %v4476_v14 }
 0x100   :  { %1868 = vst.msk [vmem:[#allocation2 + $0x12c] sm:$0xf] %vm1792_vm3, %v3729_v46  ;;  %v2953_v57 = vadd.f32 %v2952_v49, %v2951_v41  ;;  %v3343_v58 = vrot.slane %v3342_v50, 1  ;;  %v817_v59 = vpop.f32.mrf.mxu0  ;;  %v1073_v60 = vpop.f32.mrf.mxu1 }
 0x101   :  { %1802 = vst.msk [vmem:[#allocation2 + $0x24] sm:$0xf] %vm1792_vm3, %v3663_v53  ;;  %1866 = vst.msk [vmem:[#allocation2 + $0x124] sm:$0xf] %vm1792_vm3, %v3727_v54  ;;  %v3668_v61 = vpack.c.bf16 %v826_v55, %v826_v55  ;;  %v3732_v62 = vpack.c.bf16 %v1082_v56, %v1082_v56  ;;  %v818_v63 = vadd.f32 %v4476_v14, %v817_v59 }
 0x102   :  { %v1074_v0 = vadd.f32 %v4476_v14, %v1073_v60  ;;  %2955 = vst.msk [vmem:[#allocation4] sm:$0x1] %vm2954_vm6, %v2953_v57  ;;  %v3344_v1 = vadd.f32 %v3343_v58, %v3342_v50  ;;  %v3885_v2 = vpop.f32.mrf.mxu0  ;;  %v3949_v3 = vpop.f32.mrf.mxu1 }
 0x103   :  { %1807 = vst.msk [vmem:[#allocation2 + $0x38] sm:$0xf] %vm1792_vm3, %v3668_v61  ;;  %1871 = vst.msk [vmem:[#allocation2 + $0x138] sm:$0xf] %vm1792_vm3, %v3732_v62  ;;  %v3666_v4 = vpack.c.bf16 %v818_v63, %v818_v63  ;;  %v829_v6 = vadd.f32 %v3885_v2, %v4476_v14  ;;  %v1085_v7 = vadd.f32 %v3949_v3, %v4476_v14 }
 0x104   :  { %v3730_v5 = vpack.c.bf16 %v1074_v0, %v1074_v0  ;;  %3345 = vst.msk [vmem:[#allocation6] sm:$0x1] %vm2954_vm6, %v3344_v1  ;;  %v820_v8 = vpop.f32.mrf.mxu0  ;;  %v1076_v9 = vpop.f32.mrf.mxu1 }
 0x105   :  { %1805 = vst.msk [vmem:[#allocation2 + $0x30] sm:$0xf] %vm1792_vm3, %v3666_v4  ;;  %v3669_v10 = vpack.c.bf16 %v829_v6, %v829_v6  ;;  %v3733_v11 = vpack.c.bf16 %v1085_v7, %v1085_v7  ;;  %v821_v12 = vadd.f32 %v4476_v14, %v820_v8  ;;  %v1077_v13 = vadd.f32 %v4476_v14, %v1076_v9 }
 0x106   :  { %1869 = vst.msk [vmem:[#allocation2 + $0x130] sm:$0xf] %vm1792_vm3, %v3730_v5  ;;  %v3888_v15 = vpop.f32.mrf.mxu0  ;;  %v3952_v16 = vpop.f32.mrf.mxu1 }
 0x107   :  { %1808 = vst.msk [vmem:[#allocation2 + $0x3c] sm:$0xf] %vm1792_vm3, %v3669_v10  ;;  %1872 = vst.msk [vmem:[#allocation2 + $0x13c] sm:$0xf] %vm1792_vm3, %v3733_v11  ;;  %v3667_v17 = vpack.c.bf16 %v821_v12, %v821_v12  ;;  %v3731_v18 = vpack.c.bf16 %v1077_v13, %v1077_v13  ;;  %v842_v19 = vadd.f32 %v3888_v15, %v4476_v14 }
 0x108   :  { %v1098_v20 = vadd.f32 %v3952_v16, %v4476_v14  ;;  %v833_v21 = vpop.f32.mrf.mxu0  ;;  %v1089_v22 = vpop.f32.mrf.mxu1 }
 0x109   :  { %1806 = vst.msk [vmem:[#allocation2 + $0x34] sm:$0xf] %vm1792_vm3, %v3667_v17  ;;  %1870 = vst.msk [vmem:[#allocation2 + $0x134] sm:$0xf] %vm1792_vm3, %v3731_v18  ;;  %v3672_v23 = vpack.c.bf16 %v842_v19, %v842_v19  ;;  %v834_v25 = vadd.f32 %v4476_v14, %v833_v21  ;;  %v1090_v26 = vadd.f32 %v4476_v14, %v1089_v22 }
 0x10a   :  { %v3736_v24 = vpack.c.bf16 %v1098_v20, %v1098_v20  ;;  %v3889_v27 = vpop.f32.mrf.mxu0  ;;  %v3953_v28 = vpop.f32.mrf.mxu1 }
 0x10b   :  { %1811 = vst.msk [vmem:[#allocation2 + $0x48] sm:$0xf] %vm1792_vm3, %v3672_v23  ;;  %v3670_v29 = vpack.c.bf16 %v834_v25, %v834_v25  ;;  %v3734_v30 = vpack.c.bf16 %v1090_v26, %v1090_v26  ;;  %v845_v31 = vadd.f32 %v3889_v27, %v4476_v14  ;;  %v1101_v32 = vadd.f32 %v3953_v28, %v4476_v14 }
 0x10c   :  { %1875 = vst.msk [vmem:[#allocation2 + $0x148] sm:$0xf] %vm1792_vm3, %v3736_v24  ;;  %v836_v33 = vpop.f32.mrf.mxu0  ;;  %v1092_v34 = vpop.f32.mrf.mxu1 }
 0x10d   :  { %1809 = vst.msk [vmem:[#allocation2 + $0x40] sm:$0xf] %vm1792_vm3, %v3670_v29  ;;  %1873 = vst.msk [vmem:[#allocation2 + $0x140] sm:$0xf] %vm1792_vm3, %v3734_v30  ;;  %v3673_v35 = vpack.c.bf16 %v845_v31, %v845_v31  ;;  %v3737_v36 = vpack.c.bf16 %v1101_v32, %v1101_v32  ;;  %v837_v37 = vadd.f32 %v4476_v14, %v836_v33 }
 0x10e   :  { %v1093_v38 = vadd.f32 %v4476_v14, %v1092_v34  ;;  %v3892_v39 = vpop.f32.mrf.mxu0  ;;  %v3956_v40 = vpop.f32.mrf.mxu1 }
 0x10f   :  { %1812 = vst.msk [vmem:[#allocation2 + $0x4c] sm:$0xf] %vm1792_vm3, %v3673_v35  ;;  %1876 = vst.msk [vmem:[#allocation2 + $0x14c] sm:$0xf] %vm1792_vm3, %v3737_v36  ;;  %v3671_v41 = vpack.c.bf16 %v837_v37, %v837_v37  ;;  %v858_v43 = vadd.f32 %v3892_v39, %v4476_v14  ;;  %v1114_v44 = vadd.f32 %v3956_v40, %v4476_v14 }
 0x110   :  { %v3735_v42 = vpack.c.bf16 %v1093_v38, %v1093_v38  ;;  %v849_v45 = vpop.f32.mrf.mxu0  ;;  %v1105_v46 = vpop.f32.mrf.mxu1 }
 0x111   :  { %1810 = vst.msk [vmem:[#allocation2 + $0x44] sm:$0xf] %vm1792_vm3, %v3671_v41  ;;  %v3676_v47 = vpack.c.bf16 %v858_v43, %v858_v43  ;;  %v3740_v48 = vpack.c.bf16 %v1114_v44, %v1114_v44  ;;  %v850_v49 = vadd.f32 %v4476_v14, %v849_v45  ;;  %v1106_v50 = vadd.f32 %v4476_v14, %v1105_v46 }
 0x112   :  { %1874 = vst.msk [vmem:[#allocation2 + $0x144] sm:$0xf] %vm1792_vm3, %v3735_v42  ;;  %v3893_v51 = vpop.f32.mrf.mxu0  ;;  %v3957_v52 = vpop.f32.mrf.mxu1 }
 0x113   :  { %1815 = vst.msk [vmem:[#allocation2 + $0x58] sm:$0xf] %vm1792_vm3, %v3676_v47  ;;  %1879 = vst.msk [vmem:[#allocation2 + $0x158] sm:$0xf] %vm1792_vm3, %v3740_v48  ;;  %v3674_v53 = vpack.c.bf16 %v850_v49, %v850_v49  ;;  %v3738_v54 = vpack.c.bf16 %v1106_v50, %v1106_v50  ;;  %v861_v55 = vadd.f32 %v3893_v51, %v4476_v14 }
 0x114   :  { %v1117_v56 = vadd.f32 %v3957_v52, %v4476_v14  ;;  %v852_v57 = vpop.f32.mrf.mxu0  ;;  %v1108_v58 = vpop.f32.mrf.mxu1 }
 0x115   :  { %1813 = vst.msk [vmem:[#allocation2 + $0x50] sm:$0xf] %vm1792_vm3, %v3674_v53  ;;  %1877 = vst.msk [vmem:[#allocation2 + $0x150] sm:$0xf] %vm1792_vm3, %v3738_v54  ;;  %v3677_v59 = vpack.c.bf16 %v861_v55, %v861_v55  ;;  %v853_v61 = vadd.f32 %v4476_v14, %v852_v57  ;;  %v1109_v62 = vadd.f32 %v4476_v14, %v1108_v58 }
 0x116   :  { %v3741_v60 = vpack.c.bf16 %v1117_v56, %v1117_v56  ;;  %v3896_v63 = vpop.f32.mrf.mxu0  ;;  %v3960_v0 = vpop.f32.mrf.mxu1 }
 0x117   :  { %1816 = vst.msk [vmem:[#allocation2 + $0x5c] sm:$0xf] %vm1792_vm3, %v3677_v59  ;;  %v3675_v1 = vpack.c.bf16 %v853_v61, %v853_v61  ;;  %v3739_v2 = vpack.c.bf16 %v1109_v62, %v1109_v62  ;;  %v874_v3 = vadd.f32 %v3896_v63, %v4476_v14  ;;  %v1130_v4 = vadd.f32 %v3960_v0, %v4476_v14 }
 0x118   :  { %1880 = vst.msk [vmem:[#allocation2 + $0x15c] sm:$0xf] %vm1792_vm3, %v3741_v60  ;;  %v865_v5 = vpop.f32.mrf.mxu0  ;;  %v1121_v6 = vpop.f32.mrf.mxu1 }
 0x119   :  { %1814 = vst.msk [vmem:[#allocation2 + $0x54] sm:$0xf] %vm1792_vm3, %v3675_v1  ;;  %1878 = vst.msk [vmem:[#allocation2 + $0x154] sm:$0xf] %vm1792_vm3, %v3739_v2  ;;  %v3680_v7 = vpack.c.bf16 %v874_v3, %v874_v3  ;;  %v3744_v8 = vpack.c.bf16 %v1130_v4, %v1130_v4  ;;  %v866_v9 = vadd.f32 %v4476_v14, %v865_v5 }
 0x11a   :  { %v1122_v10 = vadd.f32 %v4476_v14, %v1121_v6  ;;  %v3897_v11 = vpop.f32.mrf.mxu0  ;;  %v3961_v12 = vpop.f32.mrf.mxu1 }
 0x11b   :  { %1819 = vst.msk [vmem:[#allocation2 + $0x68] sm:$0xf] %vm1792_vm3, %v3680_v7  ;;  %1883 = vst.msk [vmem:[#allocation2 + $0x168] sm:$0xf] %vm1792_vm3, %v3744_v8  ;;  %v3678_v13 = vpack.c.bf16 %v866_v9, %v866_v9  ;;  %v877_v16 = vadd.f32 %v3897_v11, %v4476_v14  ;;  %v1133_v17 = vadd.f32 %v3961_v12, %v4476_v14 }
 0x11c   :  { %v3742_v15 = vpack.c.bf16 %v1122_v10, %v1122_v10  ;;  %v868_v18 = vpop.f32.mrf.mxu0  ;;  %v1124_v19 = vpop.f32.mrf.mxu1 }
 0x11d   :  { %1817 = vst.msk [vmem:[#allocation2 + $0x60] sm:$0xf] %vm1792_vm3, %v3678_v13  ;;  %v3681_v20 = vpack.c.bf16 %v877_v16, %v877_v16  ;;  %v3745_v21 = vpack.c.bf16 %v1133_v17, %v1133_v17  ;;  %v869_v22 = vadd.f32 %v4476_v14, %v868_v18  ;;  %v1125_v23 = vadd.f32 %v4476_v14, %v1124_v19 }
 0x11e   :  { %1881 = vst.msk [vmem:[#allocation2 + $0x160] sm:$0xf] %vm1792_vm3, %v3742_v15  ;;  %v3900_v24 = vpop.f32.mrf.mxu0  ;;  %v3964_v25 = vpop.f32.mrf.mxu1 }
 0x11f   :  { %1820 = vst.msk [vmem:[#allocation2 + $0x6c] sm:$0xf] %vm1792_vm3, %v3681_v20  ;;  %1884 = vst.msk [vmem:[#allocation2 + $0x16c] sm:$0xf] %vm1792_vm3, %v3745_v21  ;;  %v3679_v26 = vpack.c.bf16 %v869_v22, %v869_v22  ;;  %v3743_v27 = vpack.c.bf16 %v1125_v23, %v1125_v23  ;;  %v890_v28 = vadd.f32 %v3900_v24, %v4476_v14 }
 0x120   :  { %v1146_v29 = vadd.f32 %v3964_v25, %v4476_v14  ;;  %v881_v30 = vpop.f32.mrf.mxu0  ;;  %v1137_v31 = vpop.f32.mrf.mxu1 }
 0x121   :  { %1818 = vst.msk [vmem:[#allocation2 + $0x64] sm:$0xf] %vm1792_vm3, %v3679_v26  ;;  %1882 = vst.msk [vmem:[#allocation2 + $0x164] sm:$0xf] %vm1792_vm3, %v3743_v27  ;;  %v3684_v32 = vpack.c.bf16 %v890_v28, %v890_v28  ;;  %v882_v34 = vadd.f32 %v4476_v14, %v881_v30  ;;  %v1138_v35 = vadd.f32 %v4476_v14, %v1137_v31 }
 0x122   :  { %v3748_v33 = vpack.c.bf16 %v1146_v29, %v1146_v29  ;;  %v3901_v36 = vpop.f32.mrf.mxu0  ;;  %v3965_v37 = vpop.f32.mrf.mxu1 }
 0x123   :  { %1823 = vst.msk [vmem:[#allocation2 + $0x78] sm:$0xf] %vm1792_vm3, %v3684_v32  ;;  %v3682_v38 = vpack.c.bf16 %v882_v34, %v882_v34  ;;  %v3746_v39 = vpack.c.bf16 %v1138_v35, %v1138_v35  ;;  %v893_v40 = vadd.f32 %v3901_v36, %v4476_v14  ;;  %v1149_v41 = vadd.f32 %v3965_v37, %v4476_v14 }
 0x124   :  { %1887 = vst.msk [vmem:[#allocation2 + $0x178] sm:$0xf] %vm1792_vm3, %v3748_v33  ;;  %v884_v42 = vpop.f32.mrf.mxu0  ;;  %v1140_v43 = vpop.f32.mrf.mxu1 }
 0x125   :  { %1821 = vst.msk [vmem:[#allocation2 + $0x70] sm:$0xf] %vm1792_vm3, %v3682_v38  ;;  %1885 = vst.msk [vmem:[#allocation2 + $0x170] sm:$0xf] %vm1792_vm3, %v3746_v39  ;;  %v3685_v44 = vpack.c.bf16 %v893_v40, %v893_v40  ;;  %v3749_v45 = vpack.c.bf16 %v1149_v41, %v1149_v41  ;;  %v885_v46 = vadd.f32 %v4476_v14, %v884_v42 }
 0x126   :  { %v1141_v47 = vadd.f32 %v4476_v14, %v1140_v43  ;;  %v3904_v48 = vpop.f32.mrf.mxu0  ;;  %v3968_v49 = vpop.f32.mrf.mxu1 }
 0x127   :  { %1824 = vst.msk [vmem:[#allocation2 + $0x7c] sm:$0xf] %vm1792_vm3, %v3685_v44  ;;  %1888 = vst.msk [vmem:[#allocation2 + $0x17c] sm:$0xf] %vm1792_vm3, %v3749_v45  ;;  %v3683_v50 = vpack.c.bf16 %v885_v46, %v885_v46  ;;  %v906_v52 = vadd.f32 %v3904_v48, %v4476_v14  ;;  %v1162_v53 = vadd.f32 %v3968_v49, %v4476_v14 }
 0x128   :  { %v3747_v51 = vpack.c.bf16 %v1141_v47, %v1141_v47  ;;  %v897_v54 = vpop.f32.mrf.mxu0  ;;  %v1153_v55 = vpop.f32.mrf.mxu1 }
 0x129   :  { %1822 = vst.msk [vmem:[#allocation2 + $0x74] sm:$0xf] %vm1792_vm3, %v3683_v50  ;;  %v3688_v56 = vpack.c.bf16 %v906_v52, %v906_v52  ;;  %v3752_v57 = vpack.c.bf16 %v1162_v53, %v1162_v53  ;;  %v898_v58 = vadd.f32 %v4476_v14, %v897_v54  ;;  %v1154_v59 = vadd.f32 %v4476_v14, %v1153_v55 }
 0x12a   :  { %1886 = vst.msk [vmem:[#allocation2 + $0x174] sm:$0xf] %vm1792_vm3, %v3747_v51  ;;  %v3905_v60 = vpop.f32.mrf.mxu0  ;;  %v3969_v61 = vpop.f32.mrf.mxu1 }
 0x12b   :  { %1827 = vst.msk [vmem:[#allocation2 + $0x88] sm:$0xf] %vm1792_vm3, %v3688_v56  ;;  %1891 = vst.msk [vmem:[#allocation2 + $0x188] sm:$0xf] %vm1792_vm3, %v3752_v57  ;;  %v3686_v62 = vpack.c.bf16 %v898_v58, %v898_v58  ;;  %v3750_v63 = vpack.c.bf16 %v1154_v59, %v1154_v59  ;;  %v909_v0 = vadd.f32 %v3905_v60, %v4476_v14 }
 0x12c   :  { %v1165_v1 = vadd.f32 %v3969_v61, %v4476_v14  ;;  %v900_v2 = vpop.f32.mrf.mxu0  ;;  %v1156_v3 = vpop.f32.mrf.mxu1 }
 0x12d   :  { %1825 = vst.msk [vmem:[#allocation2 + $0x80] sm:$0xf] %vm1792_vm3, %v3686_v62  ;;  %1889 = vst.msk [vmem:[#allocation2 + $0x180] sm:$0xf] %vm1792_vm3, %v3750_v63  ;;  %v3689_v4 = vpack.c.bf16 %v909_v0, %v909_v0  ;;  %v901_v6 = vadd.f32 %v4476_v14, %v900_v2  ;;  %v1157_v7 = vadd.f32 %v4476_v14, %v1156_v3 }
 0x12e   :  { %v3753_v5 = vpack.c.bf16 %v1165_v1, %v1165_v1  ;;  %v3908_v8 = vpop.f32.mrf.mxu0  ;;  %v3972_v9 = vpop.f32.mrf.mxu1 }
 0x12f   :  { %1828 = vst.msk [vmem:[#allocation2 + $0x8c] sm:$0xf] %vm1792_vm3, %v3689_v4  ;;  %v3687_v10 = vpack.c.bf16 %v901_v6, %v901_v6  ;;  %v3751_v11 = vpack.c.bf16 %v1157_v7, %v1157_v7  ;;  %v922_v12 = vadd.f32 %v3908_v8, %v4476_v14  ;;  %v1178_v13 = vadd.f32 %v3972_v9, %v4476_v14 }
 0x130   :  { %1892 = vst.msk [vmem:[#allocation2 + $0x18c] sm:$0xf] %vm1792_vm3, %v3753_v5  ;;  %v913_v15 = vpop.f32.mrf.mxu0  ;;  %v1169_v16 = vpop.f32.mrf.mxu1 }
 0x131   :  { %1826 = vst.msk [vmem:[#allocation2 + $0x84] sm:$0xf] %vm1792_vm3, %v3687_v10  ;;  %1890 = vst.msk [vmem:[#allocation2 + $0x184] sm:$0xf] %vm1792_vm3, %v3751_v11  ;;  %v3692_v17 = vpack.c.bf16 %v922_v12, %v922_v12  ;;  %v3756_v18 = vpack.c.bf16 %v1178_v13, %v1178_v13  ;;  %v914_v19 = vadd.f32 %v4476_v14, %v913_v15 }
 0x132   :  { %v1170_v20 = vadd.f32 %v4476_v14, %v1169_v16  ;;  %v3909_v21 = vpop.f32.mrf.mxu0  ;;  %v3973_v22 = vpop.f32.mrf.mxu1 }
 0x133   :  { %1831 = vst.msk [vmem:[#allocation2 + $0x98] sm:$0xf] %vm1792_vm3, %v3692_v17  ;;  %1895 = vst.msk [vmem:[#allocation2 + $0x198] sm:$0xf] %vm1792_vm3, %v3756_v18  ;;  %v3690_v23 = vpack.c.bf16 %v914_v19, %v914_v19  ;;  %v925_v25 = vadd.f32 %v3909_v21, %v4476_v14  ;;  %v1181_v26 = vadd.f32 %v3973_v22, %v4476_v14 }
 0x134   :  { %v3754_v24 = vpack.c.bf16 %v1170_v20, %v1170_v20  ;;  %v916_v27 = vpop.f32.mrf.mxu0  ;;  %v1172_v28 = vpop.f32.mrf.mxu1 }
 0x135   :  { %1829 = vst.msk [vmem:[#allocation2 + $0x90] sm:$0xf] %vm1792_vm3, %v3690_v23  ;;  %v3693_v29 = vpack.c.bf16 %v925_v25, %v925_v25  ;;  %v3757_v30 = vpack.c.bf16 %v1181_v26, %v1181_v26  ;;  %v917_v31 = vadd.f32 %v4476_v14, %v916_v27  ;;  %v1173_v32 = vadd.f32 %v4476_v14, %v1172_v28 }
 0x136   :  { %1893 = vst.msk [vmem:[#allocation2 + $0x190] sm:$0xf] %vm1792_vm3, %v3754_v24  ;;  %v3912_v33 = vpop.f32.mrf.mxu0  ;;  %v3976_v34 = vpop.f32.mrf.mxu1 }
 0x137   :  { %1832 = vst.msk [vmem:[#allocation2 + $0x9c] sm:$0xf] %vm1792_vm3, %v3693_v29  ;;  %1896 = vst.msk [vmem:[#allocation2 + $0x19c] sm:$0xf] %vm1792_vm3, %v3757_v30  ;;  %v3691_v35 = vpack.c.bf16 %v917_v31, %v917_v31  ;;  %v3755_v36 = vpack.c.bf16 %v1173_v32, %v1173_v32  ;;  %v938_v37 = vadd.f32 %v3912_v33, %v4476_v14 }
 0x138   :  { %v1194_v38 = vadd.f32 %v3976_v34, %v4476_v14  ;;  %v929_v39 = vpop.f32.mrf.mxu0  ;;  %v1185_v40 = vpop.f32.mrf.mxu1 }
 0x139   :  { %1830 = vst.msk [vmem:[#allocation2 + $0x94] sm:$0xf] %vm1792_vm3, %v3691_v35  ;;  %1894 = vst.msk [vmem:[#allocation2 + $0x194] sm:$0xf] %vm1792_vm3, %v3755_v36  ;;  %v3696_v41 = vpack.c.bf16 %v938_v37, %v938_v37  ;;  %v930_v43 = vadd.f32 %v4476_v14, %v929_v39  ;;  %v1186_v44 = vadd.f32 %v4476_v14, %v1185_v40 }
 0x13a   :  { %v3760_v42 = vpack.c.bf16 %v1194_v38, %v1194_v38  ;;  %v3913_v45 = vpop.f32.mrf.mxu0  ;;  %v3977_v46 = vpop.f32.mrf.mxu1 }
 0x13b   :  { %1835 = vst.msk [vmem:[#allocation2 + $0xa8] sm:$0xf] %vm1792_vm3, %v3696_v41  ;;  %v3694_v47 = vpack.c.bf16 %v930_v43, %v930_v43  ;;  %v3758_v48 = vpack.c.bf16 %v1186_v44, %v1186_v44  ;;  %v941_v49 = vadd.f32 %v3913_v45, %v4476_v14  ;;  %v1197_v50 = vadd.f32 %v3977_v46, %v4476_v14 }
 0x13c   :  { %1899 = vst.msk [vmem:[#allocation2 + $0x1a8] sm:$0xf] %vm1792_vm3, %v3760_v42  ;;  %v932_v51 = vpop.f32.mrf.mxu0  ;;  %v1188_v52 = vpop.f32.mrf.mxu1 }
 0x13d   :  { %1833 = vst.msk [vmem:[#allocation2 + $0xa0] sm:$0xf] %vm1792_vm3, %v3694_v47  ;;  %1897 = vst.msk [vmem:[#allocation2 + $0x1a0] sm:$0xf] %vm1792_vm3, %v3758_v48  ;;  %v3697_v53 = vpack.c.bf16 %v941_v49, %v941_v49  ;;  %v3761_v54 = vpack.c.bf16 %v1197_v50, %v1197_v50  ;;  %v933_v55 = vadd.f32 %v4476_v14, %v932_v51 }
 0x13e   :  { %v1189_v56 = vadd.f32 %v4476_v14, %v1188_v52  ;;  %v3916_v57 = vpop.f32.mrf.mxu0  ;;  %v3980_v58 = vpop.f32.mrf.mxu1 }
 0x13f   :  { %1836 = vst.msk [vmem:[#allocation2 + $0xac] sm:$0xf] %vm1792_vm3, %v3697_v53  ;;  %1900 = vst.msk [vmem:[#allocation2 + $0x1ac] sm:$0xf] %vm1792_vm3, %v3761_v54  ;;  %v3695_v59 = vpack.c.bf16 %v933_v55, %v933_v55  ;;  %v954_v61 = vadd.f32 %v3916_v57, %v4476_v14  ;;  %v1210_v62 = vadd.f32 %v3980_v58, %v4476_v14 }
 0x140   :  { %v3759_v60 = vpack.c.bf16 %v1189_v56, %v1189_v56  ;;  %v945_v63 = vpop.f32.mrf.mxu0  ;;  %v1201_v0 = vpop.f32.mrf.mxu1 }
 0x141   :  { %1834 = vst.msk [vmem:[#allocation2 + $0xa4] sm:$0xf] %vm1792_vm3, %v3695_v59  ;;  %v3700_v1 = vpack.c.bf16 %v954_v61, %v954_v61  ;;  %v3764_v2 = vpack.c.bf16 %v1210_v62, %v1210_v62  ;;  %v946_v3 = vadd.f32 %v4476_v14, %v945_v63  ;;  %v1202_v4 = vadd.f32 %v4476_v14, %v1201_v0 }
 0x142   :  { %1898 = vst.msk [vmem:[#allocation2 + $0x1a4] sm:$0xf] %vm1792_vm3, %v3759_v60  ;;  %v3917_v5 = vpop.f32.mrf.mxu0  ;;  %v3981_v6 = vpop.f32.mrf.mxu1 }
 0x143   :  { %1839 = vst.msk [vmem:[#allocation2 + $0xb8] sm:$0xf] %vm1792_vm3, %v3700_v1  ;;  %1903 = vst.msk [vmem:[#allocation2 + $0x1b8] sm:$0xf] %vm1792_vm3, %v3764_v2  ;;  %v3698_v7 = vpack.c.bf16 %v946_v3, %v946_v3  ;;  %v3762_v8 = vpack.c.bf16 %v1202_v4, %v1202_v4  ;;  %v957_v9 = vadd.f32 %v3917_v5, %v4476_v14 }
 0x144   :  { %v1213_v10 = vadd.f32 %v3981_v6, %v4476_v14  ;;  %v948_v11 = vpop.f32.mrf.mxu0  ;;  %v1204_v12 = vpop.f32.mrf.mxu1 }
 0x145   :  { %1837 = vst.msk [vmem:[#allocation2 + $0xb0] sm:$0xf] %vm1792_vm3, %v3698_v7  ;;  %1901 = vst.msk [vmem:[#allocation2 + $0x1b0] sm:$0xf] %vm1792_vm3, %v3762_v8  ;;  %v3701_v13 = vpack.c.bf16 %v957_v9, %v957_v9  ;;  %v949_v16 = vadd.f32 %v4476_v14, %v948_v11  ;;  %v1205_v17 = vadd.f32 %v4476_v14, %v1204_v12 }
 0x146   :  { %v3765_v15 = vpack.c.bf16 %v1213_v10, %v1213_v10  ;;  %v3920_v18 = vpop.f32.mrf.mxu0  ;;  %v3984_v19 = vpop.f32.mrf.mxu1 }
 0x147   :  { %1840 = vst.msk [vmem:[#allocation2 + $0xbc] sm:$0xf] %vm1792_vm3, %v3701_v13  ;;  %v3699_v20 = vpack.c.bf16 %v949_v16, %v949_v16  ;;  %v3763_v21 = vpack.c.bf16 %v1205_v17, %v1205_v17  ;;  %v970_v22 = vadd.f32 %v3920_v18, %v4476_v14  ;;  %v1226_v23 = vadd.f32 %v3984_v19, %v4476_v14 }
 0x148   :  { %1904 = vst.msk [vmem:[#allocation2 + $0x1bc] sm:$0xf] %vm1792_vm3, %v3765_v15  ;;  %v961_v24 = vpop.f32.mrf.mxu0  ;;  %v1217_v25 = vpop.f32.mrf.mxu1 }
 0x149   :  { %1838 = vst.msk [vmem:[#allocation2 + $0xb4] sm:$0xf] %vm1792_vm3, %v3699_v20  ;;  %1902 = vst.msk [vmem:[#allocation2 + $0x1b4] sm:$0xf] %vm1792_vm3, %v3763_v21  ;;  %v3704_v26 = vpack.c.bf16 %v970_v22, %v970_v22  ;;  %v3768_v27 = vpack.c.bf16 %v1226_v23, %v1226_v23  ;;  %v962_v28 = vadd.f32 %v4476_v14, %v961_v24 }
 0x14a   :  { %v1218_v29 = vadd.f32 %v4476_v14, %v1217_v25  ;;  %v3921_v30 = vpop.f32.mrf.mxu0  ;;  %v3985_v31 = vpop.f32.mrf.mxu1 }
 0x14b   :  { %1843 = vst.msk [vmem:[#allocation2 + $0xc8] sm:$0xf] %vm1792_vm3, %v3704_v26  ;;  %1907 = vst.msk [vmem:[#allocation2 + $0x1c8] sm:$0xf] %vm1792_vm3, %v3768_v27  ;;  %v3702_v32 = vpack.c.bf16 %v962_v28, %v962_v28  ;;  %v973_v34 = vadd.f32 %v3921_v30, %v4476_v14  ;;  %v1229_v35 = vadd.f32 %v3985_v31, %v4476_v14  ;;  %v4092_v26 = vld [vmem:[%s4749_s2] ss:$0 sm:$0xff] }
 0x14c   :  { %v3766_v33 = vpack.c.bf16 %v1218_v29, %v1218_v29  ;;  %v964_v36 = vpop.f32.mrf.mxu0  ;;  %v1220_v37 = vpop.f32.mrf.mxu1 }
 0x14d   :  { %1841 = vst.msk [vmem:[#allocation2 + $0xc0] sm:$0xf] %vm1792_vm3, %v3702_v32  ;;  %v3705_v38 = vpack.c.bf16 %v973_v34, %v973_v34  ;;  %v3769_v39 = vpack.c.bf16 %v1229_v35, %v1229_v35  ;;  %v965_v40 = vadd.f32 %v4476_v14, %v964_v36  ;;  %v1221_v41 = vadd.f32 %v4476_v14, %v1220_v37 }
 0x14e   :  { %1905 = vst.msk [vmem:[#allocation2 + $0x1c0] sm:$0xf] %vm1792_vm3, %v3766_v33  ;;  %v3924_v42 = vpop.f32.mrf.mxu0  ;;  %v3988_v43 = vpop.f32.mrf.mxu1 }
 0x14f   :  { %1844 = vst.msk [vmem:[#allocation2 + $0xcc] sm:$0xf] %vm1792_vm3, %v3705_v38  ;;  %1908 = vst.msk [vmem:[#allocation2 + $0x1cc] sm:$0xf] %vm1792_vm3, %v3769_v39  ;;  %v3703_v44 = vpack.c.bf16 %v965_v40, %v965_v40  ;;  %v3767_v45 = vpack.c.bf16 %v1221_v41, %v1221_v41  ;;  %v986_v46 = vadd.f32 %v3924_v42, %v4476_v14 }
 0x150   :  { %v1242_v47 = vadd.f32 %v3988_v43, %v4476_v14  ;;  %v977_v48 = vpop.f32.mrf.mxu0  ;;  %v1233_v49 = vpop.f32.mrf.mxu1 }
 0x151   :  { %1842 = vst.msk [vmem:[#allocation2 + $0xc4] sm:$0xf] %vm1792_vm3, %v3703_v44  ;;  %1906 = vst.msk [vmem:[#allocation2 + $0x1c4] sm:$0xf] %vm1792_vm3, %v3767_v45  ;;  %v3708_v50 = vpack.c.bf16 %v986_v46, %v986_v46  ;;  %v978_v52 = vadd.f32 %v4476_v14, %v977_v48  ;;  %v1234_v53 = vadd.f32 %v4476_v14, %v1233_v49 }
 0x152   :  { %v3772_v51 = vpack.c.bf16 %v1242_v47, %v1242_v47  ;;  %v3925_v54 = vpop.f32.mrf.mxu0  ;;  %v3989_v55 = vpop.f32.mrf.mxu1 }
 0x153   :  { %1847 = vst.msk [vmem:[#allocation2 + $0xd8] sm:$0xf] %vm1792_vm3, %v3708_v50  ;;  %v3706_v56 = vpack.c.bf16 %v978_v52, %v978_v52  ;;  %v3770_v57 = vpack.c.bf16 %v1234_v53, %v1234_v53  ;;  %v989_v58 = vadd.f32 %v3925_v54, %v4476_v14  ;;  %v1245_v59 = vadd.f32 %v3989_v55, %v4476_v14 }
 0x154   :  { %1911 = vst.msk [vmem:[#allocation2 + $0x1d8] sm:$0xf] %vm1792_vm3, %v3772_v51  ;;  %v980_v60 = vpop.f32.mrf.mxu0  ;;  %v1236_v61 = vpop.f32.mrf.mxu1 }
 0x155   :  { %1845 = vst.msk [vmem:[#allocation2 + $0xd0] sm:$0xf] %vm1792_vm3, %v3706_v56  ;;  %1909 = vst.msk [vmem:[#allocation2 + $0x1d0] sm:$0xf] %vm1792_vm3, %v3770_v57  ;;  %v3709_v62 = vpack.c.bf16 %v989_v58, %v989_v58  ;;  %v3773_v63 = vpack.c.bf16 %v1245_v59, %v1245_v59  ;;  %v981_v0 = vadd.f32 %v4476_v14, %v980_v60 }
 0x156   :  { %v1237_v1 = vadd.f32 %v4476_v14, %v1236_v61  ;;  %v3928_v2 = vpop.f32.mrf.mxu0  ;;  %v3992_v3 = vpop.f32.mrf.mxu1 }
 0x157   :  { %1848 = vst.msk [vmem:[#allocation2 + $0xdc] sm:$0xf] %vm1792_vm3, %v3709_v62  ;;  %1912 = vst.msk [vmem:[#allocation2 + $0x1dc] sm:$0xf] %vm1792_vm3, %v3773_v63  ;;  %v3707_v4 = vpack.c.bf16 %v981_v0, %v981_v0  ;;  %v1002_v6 = vadd.f32 %v3928_v2, %v4476_v14  ;;  %v1258_v7 = vadd.f32 %v3992_v3, %v4476_v14 }
 0x158   :  { %v3771_v5 = vpack.c.bf16 %v1237_v1, %v1237_v1  ;;  %v993_v8 = vpop.f32.mrf.mxu0  ;;  %v1249_v9 = vpop.f32.mrf.mxu1 }
 0x159   :  { %1846 = vst.msk [vmem:[#allocation2 + $0xd4] sm:$0xf] %vm1792_vm3, %v3707_v4  ;;  %v3712_v10 = vpack.c.bf16 %v1002_v6, %v1002_v6  ;;  %v3776_v11 = vpack.c.bf16 %v1258_v7, %v1258_v7  ;;  %v994_v12 = vadd.f32 %v4476_v14, %v993_v8  ;;  %v1250_v13 = vadd.f32 %v4476_v14, %v1249_v9 }
 0x15a   :  { %1910 = vst.msk [vmem:[#allocation2 + $0x1d4] sm:$0xf] %vm1792_vm3, %v3771_v5  ;;  %v3929_v15 = vpop.f32.mrf.mxu0  ;;  %v3993_v16 = vpop.f32.mrf.mxu1 }
 0x15b   :  { %1851 = vst.msk [vmem:[#allocation2 + $0xe8] sm:$0xf] %vm1792_vm3, %v3712_v10  ;;  %1915 = vst.msk [vmem:[#allocation2 + $0x1e8] sm:$0xf] %vm1792_vm3, %v3776_v11  ;;  %v3710_v17 = vpack.c.bf16 %v994_v12, %v994_v12  ;;  %v3774_v18 = vpack.c.bf16 %v1250_v13, %v1250_v13  ;;  %v1005_v19 = vadd.f32 %v3929_v15, %v4476_v14 }
 0x15c   :  { %v1261_v20 = vadd.f32 %v3993_v16, %v4476_v14  ;;  %v996_v21 = vpop.f32.mrf.mxu0  ;;  %v1252_v22 = vpop.f32.mrf.mxu1 }
 0x15d   :  { %1849 = vst.msk [vmem:[#allocation2 + $0xe0] sm:$0xf] %vm1792_vm3, %v3710_v17  ;;  %1913 = vst.msk [vmem:[#allocation2 + $0x1e0] sm:$0xf] %vm1792_vm3, %v3774_v18  ;;  %v3713_v23 = vpack.c.bf16 %v1005_v19, %v1005_v19  ;;  %v997_v25 = vadd.f32 %v4476_v14, %v996_v21  ;;  %v1253_v27 = vadd.f32 %v4092_v26, %v1252_v22 }
 0x15e   :  { %v3777_v24 = vpack.c.bf16 %v1261_v20, %v1261_v20  ;;  %v3932_v28 = vpop.f32.mrf.mxu0  ;;  %v3996_v29 = vpop.f32.mrf.mxu1 }
 0x15f   :  { %1852 = vst.msk [vmem:[#allocation2 + $0xec] sm:$0xf] %vm1792_vm3, %v3713_v23  ;;  %v3711_v30 = vpack.c.bf16 %v997_v25, %v997_v25  ;;  %v3775_v31 = vpack.c.bf16 %v1253_v27, %v1253_v27  ;;  %v1018_v32 = vadd.f32 %v4092_v26, %v3932_v28  ;;  %v1274_v33 = vadd.f32 %v4092_v26, %v3996_v29 }
 0x160   :  { %1916 = vst.msk [vmem:[#allocation2 + $0x1ec] sm:$0xf] %vm1792_vm3, %v3777_v24  ;;  %v1009_v34 = vpop.f32.mrf.mxu0  ;;  %v1265_v35 = vpop.f32.mrf.mxu1 }
 0x161   :  { %1850 = vst.msk [vmem:[#allocation2 + $0xe4] sm:$0xf] %vm1792_vm3, %v3711_v30  ;;  %1914 = vst.msk [vmem:[#allocation2 + $0x1e4] sm:$0xf] %vm1792_vm3, %v3775_v31  ;;  %v3716_v14 = vpack.c.bf16 %v1018_v32, %v1018_v32  ;;  %v3780_v36 = vpack.c.bf16 %v1274_v33, %v1274_v33  ;;  %v1010_v37 = vadd.f32 %v4092_v26, %v1009_v34 }
 0x162   :  { %v1266_v38 = vadd.f32 %v4092_v26, %v1265_v35  ;;  %v3933_v39 = vpop.f32.mrf.mxu0  ;;  %v3997_v40 = vpop.f32.mrf.mxu1 }
 0x163   :  { %1855 = vst.msk [vmem:[#allocation2 + $0xf8] sm:$0xf] %vm1792_vm3, %v3716_v14  ;;  %1919 = vst.msk [vmem:[#allocation2 + $0x1f8] sm:$0xf] %vm1792_vm3, %v3780_v36  ;;  %v3714_v41 = vpack.c.bf16 %v1010_v37, %v1010_v37  ;;  %v1021_v43 = vadd.f32 %v4092_v26, %v3933_v39  ;;  %v1277_v44 = vadd.f32 %v4092_v26, %v3997_v40 }
 0x164   :  { %v3778_v42 = vpack.c.bf16 %v1266_v38, %v1266_v38  ;;  %v1012_v45 = vpop.f32.mrf.mxu0  ;;  %v1268_v46 = vpop.f32.mrf.mxu1 }
 0x165   :  { %1853 = vst.msk [vmem:[#allocation2 + $0xf0] sm:$0xf] %vm1792_vm3, %v3714_v41  ;;  %v3717_v47 = vpack.c.bf16 %v1021_v43, %v1021_v43  ;;  %v3781_v48 = vpack.c.bf16 %v1277_v44, %v1277_v44  ;;  %v1013_v49 = vadd.f32 %v4092_v26, %v1012_v45  ;;  %v1269_v50 = vadd.f32 %v4092_v26, %v1268_v46 }
 0x166   :  { %1917 = vst.msk [vmem:[#allocation2 + $0x1f0] sm:$0xf] %vm1792_vm3, %v3778_v42 }
 0x167   :  { %1856 = vst.msk [vmem:[#allocation2 + $0xfc] sm:$0xf] %vm1792_vm3, %v3717_v47  ;;  %1920 = vst.msk [vmem:[#allocation2 + $0x1fc] sm:$0xf] %vm1792_vm3, %v3781_v48  ;;  %v3715_v51 = vpack.c.bf16 %v1013_v49, %v1013_v49  ;;  %v3779_v52 = vpack.c.bf16 %v1269_v50, %v1269_v50 }
 0x169   :  { %1854 = vst.msk [vmem:[#allocation2 + $0xf4] sm:$0xf] %vm1792_vm3, %v3715_v51  ;;  %1918 = vst.msk [vmem:[#allocation2 + $0x1f4] sm:$0xf] %vm1792_vm3, %v3779_v52 }
 0x16a   :  { %3350 = vsyncadd [#allocation3], 7936  ;;  %s4158_s2 = smov [#allocation4]   ;;  %s4159_s11 = smov [#allocation2]  }
 0x16b   :  { %s3364_s10 = sshll.u32 %s4158_s2, 4  ;;  %s3351_s12 = sshll.u32 %s4159_s11, 4  ;;  %s3365_s10 = int_to_ptr.vmem [resolvable:$true] %s3364_s10  ;;  %s3352_s12 = int_to_ptr.vmem [resolvable:$true] %s3351_s12 }
 0x16c   :  { %s4093_s13 = scalar_lea.vmem %s3365_s10, 16  ;;  %s4097_s14 = scalar_lea.vmem %s3365_s10, 32 }
 0x16d   :  { %p4094_p0 = scmp.ne.s32.totalorder %s3365_s10, %s4093_s13  ;;  %p4098_p1 = scmp.lt.s32.totalorder %s3365_s10, %s3365_s10 }
 0x16e   :  { %p4099_p2 = scmp.lt.s32.totalorder %s4097_s14, %s4093_s13 }
 0x170   :  { %p4100_p3 = por %p4099_p2, %p4098_p1 }
 0x172   :  { %p4101_p4 = pnand %p4100_p3, %p4094_p0 }
 0x174   :  { %4104 = shalt.err (!%p4101_p4)
}
 0x175   :  { %3367 = dma.vmem_to_hbm [thread:$0]  %s3365_s10, 16, %s4751_s4, [#allocation5]  }
 0x176   :  { %s4113_s17 = scalar_lea.vmem %s3352_s12, 256  ;;  %s4117_s18 = scalar_lea.vmem %s3352_s12, 8192 }
 0x177   :  { %p4114_p5 = scmp.ne.s32.totalorder %s3352_s12, %s4113_s17  ;;  %p4118_p6 = scmp.lt.s32.totalorder %s3352_s12, %s3352_s12 }
 0x178   :  { %p4119_p7 = scmp.lt.s32.totalorder %s4117_s18, %s4113_s17 }
 0x17a   :  { %p4120_p8 = por %p4119_p7, %p4118_p6 }
 0x17c   :  { %p4121_p9 = pnand %p4120_p8, %p4114_p5 }
 0x17e   :  { %4124 = shalt.err (!%p4121_p9)
}
 0x17f   :  { %s4160_s19 = smov 64   ;;  %s4161_s1 = smov 4  }
 0x180   :  { %3357 = dma.vmem_to_hbm [thread:$0]  %s3352_s12, 256, %s4750_s3, [#allocation3], %s4160_s19, %s4160_s19, %s4161_s1  }
 0x181   :  { %s4162_s22 = smov [#allocation6]  }
 0x182   :  { %s3374_s23 = sshll.u32 %s4162_s22, 4  ;;  %s3375_s23 = int_to_ptr.vmem [resolvable:$true] %s3374_s23 }
 0x183   :  { %s4133_s24 = scalar_lea.vmem %s3375_s23, 16  ;;  %s4137_s4 = scalar_lea.vmem %s3375_s23, 32 }
 0x184   :  { %p4134_p10 = scmp.ne.s32.totalorder %s3375_s23, %s4133_s24  ;;  %p4138_p11 = scmp.lt.s32.totalorder %s3375_s23, %s3375_s23 }
 0x185   :  { %p4139_p12 = scmp.lt.s32.totalorder %s4137_s4, %s4133_s24 }
 0x187   :  { %p4140_p13 = por %p4139_p12, %p4138_p11 }
 0x189   :  { %p4141_p0 = pnand %p4140_p13, %p4134_p10 }
 0x18b   :  { %4144 = shalt.err (!%p4141_p0)
}
 0x18c   :  { %3377 = dma.vmem_to_hbm [thread:$0]  %s3375_s23, 16, %s4752_s5, [#allocation5]  }
 0x18d   :  { %4153 = dma.done.wait [#allocation3], 8192  }
 0x18e   :  { %4154 = vsyncadd [#allocation3], 4294959104 }
 0x18f   :  { %4155 = dma.done.wait [#allocation5], 32  }
 0x190   :  { %4156 = vsyncadd [#allocation5], 4294967264 }
 0x191   :  { %3387 = vsyncpa [#allocation3], 1 }
 0x192   :  { %3388 = vsyncpa [#allocation5], 1 }

</bundles_post_ra>
